<compile_context>
chip_gen: v7x
topology: tpu7x:2x2x1
jax: 0.10.0
libtpu: 0.0.40
codegen_flags: <defaults>
</compile_context>

<pallas_src>
import math
import jax
import jax.numpy as jnp
from jax import lax
from jax.experimental import pallas as pl
from jax.experimental.pallas import tpu as pltpu

# ----- synthetic config (small shapes consistent with the module) -----
B, S, H = 2, 8, 32          # batch, seq len, hidden size
BS = B * S
NH, HD = 4, 8               # heads, head dim (NH * HD == H)
FF = 64                     # FFN intermediate size
VOCAB = 64                  # synthetic vocab size
INIT_RANGE = 0.02           # config.initializer_range (roberta default)
LN_EPS = 1e-5
LANES = 128                 # lane-dense output width
PACKW = 3 * H               # width of the packed small-vector array (96)


# ---------------------------------------------------------------------
# Single fused kernel: encoder layer + QA head + CrossEntropy loss
# ---------------------------------------------------------------------
def fused_encoder_qa_kernel(x_ref, bias_ref, vec_ref, wqkv_ref, wpack_ref,
                            w2_ref, labels_ref, logits_ref, loss_ref):
    f32 = jnp.float32
    x = x_ref[...]                               # (BS, H)

    gammas = vec_ref[0:1, :]                     # (1, 3H): [ln0g | ln1g | ln2g]
    betas = vec_ref[1:2, :]                      # (1, 3H): [ln0b | ln1b | ln2b]

    def layer_norm(v, idx):
        g = gammas[:, idx * H:(idx + 1) * H]
        bet = betas[:, idx * H:(idx + 1) * H]
        mu = jnp.mean(v, axis=-1, keepdims=True)
        var = jnp.mean((v - mu) ** 2, axis=-1, keepdims=True)
        return (v - mu) * lax.rsqrt(var + LN_EPS) * g + bet

    # embedding LayerNorm
    x = layer_norm(x, 0)

    # fused QKV projection: one (BS,H)@(H,3H) MXU pass + packed bias row
    qkv = jnp.dot(x, wqkv_ref[...], preferred_element_type=f32) + vec_ref[2:3, :]

    # additive attention bias (BS, BS): 0 where same batch & key attended,
    # -1e9 otherwise (cross-batch + padded keys).  exp(-1e9 - m) == 0 in f32,
    # so the packed-batch attention is exact.
    bias = bias_ref[...]
    scale = 1.0 / math.sqrt(HD)
    dn = (((1,), (1,)), ((), ()))                # contract HD of both operands

    ctx_heads = []
    for h in range(NH):                          # static unroll; 2 MXU ops/head
        qh = qkv[:, h * HD:(h + 1) * HD]                       # (BS, HD)
        kh = qkv[:, H + h * HD:H + (h + 1) * HD]               # (BS, HD)
        vh = qkv[:, 2 * H + h * HD:2 * H + (h + 1) * HD]       # (BS, HD)
        s = lax.dot_general(qh, kh, dn, preferred_element_type=f32) * scale
        s = s + bias                                           # (BS, BS)
        m = jnp.max(s, axis=-1, keepdims=True)
        e = jnp.exp(s - m)
        p = e * pl.reciprocal(jnp.sum(e, axis=-1, keepdims=True), approx=True)
        ctx_heads.append(jnp.dot(p, vh, preferred_element_type=f32))
    ctx = jnp.concatenate(ctx_heads, axis=-1)                  # (BS, H)

    # attention output projection + residual LayerNorm
    wo = wpack_ref[:, 0:H]
    attn_out = jnp.dot(ctx, wo, preferred_element_type=f32) + vec_ref[3:4, 0:H]
    x = layer_norm(x + attn_out, 1)

    # FFN + residual LayerNorm
    w1 = wpack_ref[:, H:H + FF]
    hdn = jnp.dot(x, w1, preferred_element_type=f32) + vec_ref[4:5, 0:FF]
    # TODO(synk): HF XLM-R uses exact erf GELU; tanh approximation used here.
    hdn = jax.nn.gelu(hdn, approximate=True)
    ffn = jnp.dot(hdn, w2_ref[...], preferred_element_type=f32) + vec_ref[3:4, H:2 * H]
    x = layer_norm(x + ffn, 2)

    # QA head: two dot-with-vector lane reductions (qa weight rows are packed
    # in vec_ref rows 5/6, biases at row 3 lanes [2H, 2H+2)).
    w_start = vec_ref[5:6, 0:H]                                # (1, H)
    w_end = vec_ref[6:7, 0:H]
    b_start = vec_ref[3:4, 2 * H:2 * H + 1]                    # (1, 1)
    b_end = vec_ref[3:4, 2 * H + 1:2 * H + 2]
    start_col = jnp.sum(x * w_start, axis=-1, keepdims=True) + b_start   # (BS,1)
    end_col = jnp.sum(x * w_end, axis=-1, keepdims=True) + b_end         # (BS,1)

    # lane-dense output slab: one unmasked (BS, 128) store
    # column 0 = start logits (flattened b*S+s), column 1 = end logits
    pad = jnp.zeros((BS, LANES - 2), f32)
    logits_ref[...] = jnp.concatenate([start_col, end_col, pad], axis=-1)

    # CrossEntropyLoss(ignore_index=-1) on start/end positions.
    # NOTE: if every label of one kind is -1 this is 0/0 -> NaN, matching
    # PyTorch CrossEntropyLoss behaviour with all-ignored targets.
    pos = lax.broadcasted_iota(jnp.int32, (S, 1), 0)

    def ce_terms(col_b, lbl):
        m0 = jnp.max(col_b)
        lse = m0 + jnp.log(jnp.sum(jnp.exp(col_b - m0)))
        picked = jnp.sum(jnp.where(pos == lbl, col_b, 0.0))
        valid = jnp.where(lbl != -1, 1.0, 0.0)
        return (lse - picked) * valid, valid

    s_num = 0.0
    s_den = 0.0
    e_num = 0.0
    e_den = 0.0
    for b in range(B):                                          # static unroll
        sc_b = start_col[b * S:(b + 1) * S, :]                  # (S, 1)
        ec_b = end_col[b * S:(b + 1) * S, :]
        ns, vs = ce_terms(sc_b, labels_ref[0, b])               # SMEM scalars
        ne, ve = ce_terms(ec_b, labels_ref[1, b])
        s_num = s_num + ns
        s_den = s_den + vs
        e_num = e_num + ne
        e_den = e_den + ve

    loss_ref[0, 0] = 0.5 * (s_num / s_den + e_num / e_den)


def run_fused(x, attn_bias, vec, wqkv, wpack, w2, labels):
    vmem = pltpu.MemorySpace.VMEM
    smem = pltpu.MemorySpace.SMEM
    return pl.pallas_call(
        fused_encoder_qa_kernel,
        out_shape=(jax.ShapeDtypeStruct((BS, LANES), jnp.float32),
                   jax.ShapeDtypeStruct((1, 1), jnp.float32)),
        in_specs=[pl.BlockSpec(memory_space=vmem),   # x (BS, H)
                  pl.BlockSpec(memory_space=vmem),   # attn_bias (BS, BS)
                  pl.BlockSpec(memory_space=vmem),   # packed vectors (8, 96)
                  pl.BlockSpec(memory_space=vmem),   # wqkv (H, 3H)
                  pl.BlockSpec(memory_space=vmem),   # [wo | w1] (H, H+FF)
                  pl.BlockSpec(memory_space=vmem),   # w2 (FF, H)
                  pl.BlockSpec(memory_space=smem)],  # labels (2, B) int32
        out_specs=(pl.BlockSpec(memory_space=vmem),  # logits slab (BS, 128)
                   pl.BlockSpec(memory_space=smem)), # loss (1, 1)
    )(x, attn_bias, vec, wqkv, wpack, w2, labels)


# ---------------------------------------------------------------------
# Parameters + packing + forward glue
# ---------------------------------------------------------------------
def init_params(key):
    ks = jax.random.split(key, 10)

    def normal(k, shape, std=INIT_RANGE):
        return (std * jax.random.normal(k, shape)).astype(jnp.float32)

    zeros = lambda *s: jnp.zeros(s, jnp.float32)
    ones = lambda *s: jnp.ones(s, jnp.float32)
    return {
        "word_emb": normal(ks[0], (VOCAB, H)),
        "pos_emb": normal(ks[1], (S, H)),
        "ln0g": ones(H), "ln0b": zeros(H),
        "wq": normal(ks[2], (H, H)), "bq": zeros(H),
        "wk": normal(ks[3], (H, H)), "bk": zeros(H),
        "wv": normal(ks[4], (H, H)), "bv": zeros(H),
        "wo": normal(ks[5], (H, H)), "bo": zeros(H),
        "ln1g": ones(H), "ln1b": zeros(H),
        "w1": normal(ks[6], (H, FF)), "b1": zeros(FF),
        "w2": normal(ks[7], (FF, H)), "b2": zeros(H),
        "ln2g": ones(H), "ln2b": zeros(H),
        # qa_outputs: nn.Linear(H, 2): weight ~ N(0, initializer_range), bias 0
        "qa_w": normal(ks[8], (2, H)), "qa_b": zeros(2),
    }


def pack_params(params):
    def row(*pieces):
        v = jnp.concatenate(pieces)
        return jnp.pad(v, (0, PACKW - v.shape[0]))

    vec = jnp.stack([
        row(params["ln0g"], params["ln1g"], params["ln2g"]),   # row 0: gammas
        row(params["ln0b"], params["ln1b"], params["ln2b"]),   # row 1: betas
        row(params["bq"], params["bk"], params["bv"]),         # row 2: bqkv
        row(params["bo"], params["b2"], params["qa_b"]),       # row 3
        row(params["b1"]),                                     # row 4
        row(params["qa_w"][0]),                                # row 5: w_start
        row(params["qa_w"][1]),                                # row 6: w_end
        jnp.zeros((PACKW,), jnp.float32),                      # row 7: pad
    ])                                                         # (8, 96)
    wqkv = jnp.concatenate([params["wq"], params["wk"], params["wv"]], axis=1)
    wpack = jnp.concatenate([params["wo"], params["w1"]], axis=1)  # (H, H+FF)
    return vec, wqkv, wpack, params["w2"]


def build_attn_bias(attention_mask):
    # (B, S) {0,1} -> (B*S, B*S) additive bias: 0 where the query may attend
    # to the key (same batch element AND key not padded), else -1e9.
    key_ok = attention_mask.reshape(1, BS) > 0.5
    bid = jnp.repeat(jnp.arange(B, dtype=jnp.int32), S)
    same = bid[:, None] == bid[None, :]
    ok = jnp.logical_and(same, key_ok)
    return jnp.where(ok, 0.0, -1e9).astype(jnp.float32)


@jax.jit
def forward(params, input_ids, attention_mask, start_positions, end_positions):
    # embedding lookup + position embeddings: plain-JAX gather glue
    x = jnp.take(params["word_emb"], input_ids, axis=0) + params["pos_emb"][None]
    x = x.reshape(BS, H).astype(jnp.float32)

    attn_bias = build_attn_bias(attention_mask)
    vec, wqkv, wpack, w2 = pack_params(params)
    labels = jnp.stack([start_positions.reshape(-1),
                        end_positions.reshape(-1)]).astype(jnp.int32)   # (2, B)

    slab, loss = run_fused(x, attn_bias, vec, wqkv, wpack, w2, labels)

    start_logits = slab[:, 0].reshape(B, S)   # wrapper-side layout plumbing
    end_logits = slab[:, 1].reshape(B, S)
    return {"start_logits": start_logits,
            "end_logits": end_logits,
            "loss": loss[0, 0]}


if __name__ == "__main__":
    key = jax.random.PRNGKey(0)
    kp, kids = jax.random.split(key)
    params = init_params(kp)

    input_ids = jax.random.randint(kids, (B, S), 0, VOCAB, dtype=jnp.int32)
    attention_mask = jnp.array([[1.0] * S,
                                [1.0] * 6 + [0.0] * 2], dtype=jnp.float32)
    start_positions = jnp.array([1, 3], dtype=jnp.int32)
    end_positions = jnp.array([2, -1], dtype=jnp.int32)   # -1 exercises ignore_index

    out = forward(params, input_ids, attention_mask, start_positions, end_positions)
    out = jax.block_until_ready(out)

    assert out["start_logits"].shape == (B, S)
    assert out["end_logits"].shape == (B, S)
    assert bool(jnp.all(jnp.isfinite(out["start_logits"])))
    assert bool(jnp.all(jnp.isfinite(out["end_logits"])))
    assert bool(jnp.isfinite(out["loss"]))
    print("KERNEL_OK")
</pallas_src>

<mosaic_0001>
module attributes {stable_mosaic.version = 11 : i64} {
  func.func @fused_encoder_qa_kernel(%arg0: memref<16x32xf32, #tpu.memory_space<vmem>>, %arg1: memref<16x16xf32, #tpu.memory_space<vmem>>, %arg2: memref<8x96xf32, #tpu.memory_space<vmem>>, %arg3: memref<32x96xf32, #tpu.memory_space<vmem>>, %arg4: memref<32x96xf32, #tpu.memory_space<vmem>>, %arg5: memref<64x32xf32, #tpu.memory_space<vmem>>, %arg6: memref<2x2xi32, #tpu.memory_space<smem>>, %arg7: memref<16x128xf32, #tpu.memory_space<vmem>>, %arg8: memref<1x1xf32, #tpu.memory_space<smem>>) attributes {dimension_semantics = [], scalar_prefetch = 0 : i64, scratch_operands = 0 : i64, tpu.core_type = #tpu.core_type<tc>} {
    %c0 = arith.constant 0 : index
    %c0_0 = arith.constant 0 : index
    %0 = vector.load %arg0[%c0, %c0_0] : memref<16x32xf32, #tpu.memory_space<vmem>>, vector<16x32xf32>
    %c0_1 = arith.constant 0 : index
    %c0_2 = arith.constant 0 : index
    %1 = vector.load %arg2[%c0_1, %c0_2] : memref<8x96xf32, #tpu.memory_space<vmem>>, vector<1x96xf32>
    %c1 = arith.constant 1 : index
    %c0_3 = arith.constant 0 : index
    %2 = vector.load %arg2[%c1, %c0_3] : memref<8x96xf32, #tpu.memory_space<vmem>>, vector<1x96xf32>
    %3 = vector.extract_strided_slice %1 {offsets = [0, 0], sizes = [1, 32], strides = [1, 1]} : vector<1x96xf32> to vector<1x32xf32>
    %4 = vector.extract_strided_slice %2 {offsets = [0, 0], sizes = [1, 32], strides = [1, 1]} : vector<1x96xf32> to vector<1x32xf32>
    %cst = arith.constant dense<0.000000e+00> : vector<16xf32>
    %5 = vector.multi_reduction <add>, %0, %cst [1] : vector<16x32xf32> to vector<16xf32>
    %6 = vector.shape_cast %5 : vector<16xf32> to vector<16x1xf32>
    %cst_4 = arith.constant 3.200000e+01 : f32
    %7 = vector.broadcast %cst_4 : f32 to vector<16x1xf32>
    %8 = arith.divf %6, %7 : vector<16x1xf32>
    %9 = vector.broadcast %8 : vector<16x1xf32> to vector<16x32xf32>
    %10 = arith.subf %0, %9 : vector<16x32xf32>
    %11 = arith.mulf %10, %10 : vector<16x32xf32>
    %cst_5 = arith.constant dense<0.000000e+00> : vector<16xf32>
    %12 = vector.multi_reduction <add>, %11, %cst_5 [1] : vector<16x32xf32> to vector<16xf32>
    %13 = vector.shape_cast %12 : vector<16xf32> to vector<16x1xf32>
    %cst_6 = arith.constant 3.200000e+01 : f32
    %14 = vector.broadcast %cst_6 : f32 to vector<16x1xf32>
    %15 = arith.divf %13, %14 : vector<16x1xf32>
    %16 = vector.broadcast %8 : vector<16x1xf32> to vector<16x32xf32>
    %17 = arith.subf %0, %16 : vector<16x32xf32>
    %cst_7 = arith.constant 9.99999974E-6 : f32
    %18 = vector.broadcast %cst_7 : f32 to vector<16x1xf32>
    %19 = arith.addf %15, %18 : vector<16x1xf32>
    %20 = math.rsqrt %19 : vector<16x1xf32>
    %21 = vector.broadcast %20 : vector<16x1xf32> to vector<16x32xf32>
    %22 = arith.mulf %17, %21 : vector<16x32xf32>
    %23 = vector.broadcast %3 : vector<1x32xf32> to vector<16x32xf32>
    %24 = arith.mulf %22, %23 : vector<16x32xf32>
    %25 = vector.broadcast %4 : vector<1x32xf32> to vector<16x32xf32>
    %26 = arith.addf %24, %25 : vector<16x32xf32>
    %c0_8 = arith.constant 0 : index
    %c0_9 = arith.constant 0 : index
    %27 = vector.load %arg3[%c0_8, %c0_9] : memref<32x96xf32, #tpu.memory_space<vmem>>, vector<32x96xf32>
    %cst_10 = arith.constant dense<0.000000e+00> : vector<16x96xf32>
    %28 = tpu.matmul %26, %27, %cst_10 {dimension_numbers = #tpu.dot_dimension_numbers<[1], [0], [0], [1], [0, 0, 1, 1], [], []>} : vector<16x32xf32>, vector<32x96xf32>, vector<16x96xf32> -> vector<16x96xf32>
    %c2 = arith.constant 2 : index
    %c0_11 = arith.constant 0 : index
    %29 = vector.load %arg2[%c2, %c0_11] : memref<8x96xf32, #tpu.memory_space<vmem>>, vector<1x96xf32>
    %30 = vector.broadcast %29 : vector<1x96xf32> to vector<16x96xf32>
    %31 = arith.addf %28, %30 : vector<16x96xf32>
    %c0_12 = arith.constant 0 : index
    %c0_13 = arith.constant 0 : index
    %32 = vector.load %arg1[%c0_12, %c0_13] : memref<16x16xf32, #tpu.memory_space<vmem>>, vector<16x16xf32>
    %33 = vector.extract_strided_slice %31 {offsets = [0, 0], sizes = [16, 8], strides = [1, 1]} : vector<16x96xf32> to vector<16x8xf32>
    %34 = vector.extract_strided_slice %31 {offsets = [0, 32], sizes = [16, 8], strides = [1, 1]} : vector<16x96xf32> to vector<16x8xf32>
    %35 = vector.extract_strided_slice %31 {offsets = [0, 64], sizes = [16, 8], strides = [1, 1]} : vector<16x96xf32> to vector<16x8xf32>
    %cst_14 = arith.constant dense<0.000000e+00> : vector<16x16xf32>
    %36 = tpu.matmul %33, %34, %cst_14 {dimension_numbers = #tpu.dot_dimension_numbers<[1], [1], [0], [0], [0, 0, 1, 0], [], []>} : vector<16x8xf32>, vector<16x8xf32>, vector<16x16xf32> -> vector<16x16xf32>
    %cst_15 = arith.constant 0.353553385 : f32
    %37 = vector.broadcast %cst_15 : f32 to vector<16x16xf32>
    %38 = arith.mulf %36, %37 : vector<16x16xf32>
    %39 = arith.addf %38, %32 : vector<16x16xf32>
    %cst_16 = arith.constant dense<0xFF800000> : vector<16xf32>
    %40 = vector.multi_reduction <maximumf>, %39, %cst_16 [1] : vector<16x16xf32> to vector<16xf32>
    %41 = vector.shape_cast %40 : vector<16xf32> to vector<16x1xf32>
    %42 = vector.broadcast %41 : vector<16x1xf32> to vector<16x16xf32>
    %43 = arith.subf %39, %42 : vector<16x16xf32>
    %44 = math.exp %43 : vector<16x16xf32>
    %cst_17 = arith.constant dense<0.000000e+00> : vector<16xf32>
    %45 = vector.multi_reduction <add>, %44, %cst_17 [1] : vector<16x16xf32> to vector<16xf32>
    %46 = vector.shape_cast %45 : vector<16xf32> to vector<16x1xf32>
    %47 = tpu.reciprocal %46 {approx = true} : vector<16x1xf32> -> vector<16x1xf32>
    %48 = vector.broadcast %47 : vector<16x1xf32> to vector<16x16xf32>
    %49 = arith.mulf %44, %48 : vector<16x16xf32>
    %cst_18 = arith.constant dense<0.000000e+00> : vector<16x8xf32>
    %50 = tpu.matmul %49, %35, %cst_18 {dimension_numbers = #tpu.dot_dimension_numbers<[1], [0], [0], [1], [0, 0, 1, 1], [], []>} : vector<16x16xf32>, vector<16x8xf32>, vector<16x8xf32> -> vector<16x8xf32>
    %51 = vector.extract_strided_slice %31 {offsets = [0, 8], sizes = [16, 8], strides = [1, 1]} : vector<16x96xf32> to vector<16x8xf32>
    %52 = vector.extract_strided_slice %31 {offsets = [0, 40], sizes = [16, 8], strides = [1, 1]} : vector<16x96xf32> to vector<16x8xf32>
    %53 = vector.extract_strided_slice %31 {offsets = [0, 72], sizes = [16, 8], strides = [1, 1]} : vector<16x96xf32> to vector<16x8xf32>
    %cst_19 = arith.constant dense<0.000000e+00> : vector<16x16xf32>
    %54 = tpu.matmul %51, %52, %cst_19 {dimension_numbers = #tpu.dot_dimension_numbers<[1], [1], [0], [0], [0, 0, 1, 0], [], []>} : vector<16x8xf32>, vector<16x8xf32>, vector<16x16xf32> -> vector<16x16xf32>
    %cst_20 = arith.constant 0.353553385 : f32
    %55 = vector.broadcast %cst_20 : f32 to vector<16x16xf32>
    %56 = arith.mulf %54, %55 : vector<16x16xf32>
    %57 = arith.addf %56, %32 : vector<16x16xf32>
    %cst_21 = arith.constant dense<0xFF800000> : vector<16xf32>
    %58 = vector.multi_reduction <maximumf>, %57, %cst_21 [1] : vector<16x16xf32> to vector<16xf32>
    %59 = vector.shape_cast %58 : vector<16xf32> to vector<16x1xf32>
    %60 = vector.broadcast %59 : vector<16x1xf32> to vector<16x16xf32>
    %61 = arith.subf %57, %60 : vector<16x16xf32>
    %62 = math.exp %61 : vector<16x16xf32>
    %cst_22 = arith.constant dense<0.000000e+00> : vector<16xf32>
    %63 = vector.multi_reduction <add>, %62, %cst_22 [1] : vector<16x16xf32> to vector<16xf32>
    %64 = vector.shape_cast %63 : vector<16xf32> to vector<16x1xf32>
    %65 = tpu.reciprocal %64 {approx = true} : vector<16x1xf32> -> vector<16x1xf32>
    %66 = vector.broadcast %65 : vector<16x1xf32> to vector<16x16xf32>
    %67 = arith.mulf %62, %66 : vector<16x16xf32>
    %cst_23 = arith.constant dense<0.000000e+00> : vector<16x8xf32>
    %68 = tpu.matmul %67, %53, %cst_23 {dimension_numbers = #tpu.dot_dimension_numbers<[1], [0], [0], [1], [0, 0, 1, 1], [], []>} : vector<16x16xf32>, vector<16x8xf32>, vector<16x8xf32> -> vector<16x8xf32>
    %69 = vector.extract_strided_slice %31 {offsets = [0, 16], sizes = [16, 8], strides = [1, 1]} : vector<16x96xf32> to vector<16x8xf32>
    %70 = vector.extract_strided_slice %31 {offsets = [0, 48], sizes = [16, 8], strides = [1, 1]} : vector<16x96xf32> to vector<16x8xf32>
    %71 = vector.extract_strided_slice %31 {offsets = [0, 80], sizes = [16, 8], strides = [1, 1]} : vector<16x96xf32> to vector<16x8xf32>
    %cst_24 = arith.constant dense<0.000000e+00> : vector<16x16xf32>
    %72 = tpu.matmul %69, %70, %cst_24 {dimension_numbers = #tpu.dot_dimension_numbers<[1], [1], [0], [0], [0, 0, 1, 0], [], []>} : vector<16x8xf32>, vector<16x8xf32>, vector<16x16xf32> -> vector<16x16xf32>
    %cst_25 = arith.constant 0.353553385 : f32
    %73 = vector.broadcast %cst_25 : f32 to vector<16x16xf32>
    %74 = arith.mulf %72, %73 : vector<16x16xf32>
    %75 = arith.addf %74, %32 : vector<16x16xf32>
    %cst_26 = arith.constant dense<0xFF800000> : vector<16xf32>
    %76 = vector.multi_reduction <maximumf>, %75, %cst_26 [1] : vector<16x16xf32> to vector<16xf32>
    %77 = vector.shape_cast %76 : vector<16xf32> to vector<16x1xf32>
    %78 = vector.broadcast %77 : vector<16x1xf32> to vector<16x16xf32>
    %79 = arith.subf %75, %78 : vector<16x16xf32>
    %80 = math.exp %79 : vector<16x16xf32>
    %cst_27 = arith.constant dense<0.000000e+00> : vector<16xf32>
    %81 = vector.multi_reduction <add>, %80, %cst_27 [1] : vector<16x16xf32> to vector<16xf32>
    %82 = vector.shape_cast %81 : vector<16xf32> to vector<16x1xf32>
    %83 = tpu.reciprocal %82 {approx = true} : vector<16x1xf32> -> vector<16x1xf32>
    %84 = vector.broadcast %83 : vector<16x1xf32> to vector<16x16xf32>
    %85 = arith.mulf %80, %84 : vector<16x16xf32>
    %cst_28 = arith.constant dense<0.000000e+00> : vector<16x8xf32>
    %86 = tpu.matmul %85, %71, %cst_28 {dimension_numbers = #tpu.dot_dimension_numbers<[1], [0], [0], [1], [0, 0, 1, 1], [], []>} : vector<16x16xf32>, vector<16x8xf32>, vector<16x8xf32> -> vector<16x8xf32>
    %87 = vector.extract_strided_slice %31 {offsets = [0, 24], sizes = [16, 8], strides = [1, 1]} : vector<16x96xf32> to vector<16x8xf32>
    %88 = vector.extract_strided_slice %31 {offsets = [0, 56], sizes = [16, 8], strides = [1, 1]} : vector<16x96xf32> to vector<16x8xf32>
    %89 = vector.extract_strided_slice %31 {offsets = [0, 88], sizes = [16, 8], strides = [1, 1]} : vector<16x96xf32> to vector<16x8xf32>
    %cst_29 = arith.constant dense<0.000000e+00> : vector<16x16xf32>
    %90 = tpu.matmul %87, %88, %cst_29 {dimension_numbers = #tpu.dot_dimension_numbers<[1], [1], [0], [0], [0, 0, 1, 0], [], []>} : vector<16x8xf32>, vector<16x8xf32>, vector<16x16xf32> -> vector<16x16xf32>
    %cst_30 = arith.constant 0.353553385 : f32
    %91 = vector.broadcast %cst_30 : f32 to vector<16x16xf32>
    %92 = arith.mulf %90, %91 : vector<16x16xf32>
    %93 = arith.addf %92, %32 : vector<16x16xf32>
    %cst_31 = arith.constant dense<0xFF800000> : vector<16xf32>
    %94 = vector.multi_reduction <maximumf>, %93, %cst_31 [1] : vector<16x16xf32> to vector<16xf32>
    %95 = vector.shape_cast %94 : vector<16xf32> to vector<16x1xf32>
    %96 = vector.broadcast %95 : vector<16x1xf32> to vector<16x16xf32>
    %97 = arith.subf %93, %96 : vector<16x16xf32>
    %98 = math.exp %97 : vector<16x16xf32>
    %cst_32 = arith.constant dense<0.000000e+00> : vector<16xf32>
    %99 = vector.multi_reduction <add>, %98, %cst_32 [1] : vector<16x16xf32> to vector<16xf32>
    %100 = vector.shape_cast %99 : vector<16xf32> to vector<16x1xf32>
    %101 = tpu.reciprocal %100 {approx = true} : vector<16x1xf32> -> vector<16x1xf32>
    %102 = vector.broadcast %101 : vector<16x1xf32> to vector<16x16xf32>
    %103 = arith.mulf %98, %102 : vector<16x16xf32>
    %cst_33 = arith.constant dense<0.000000e+00> : vector<16x8xf32>
    %104 = tpu.matmul %103, %89, %cst_33 {dimension_numbers = #tpu.dot_dimension_numbers<[1], [0], [0], [1], [0, 0, 1, 1], [], []>} : vector<16x16xf32>, vector<16x8xf32>, vector<16x8xf32> -> vector<16x8xf32>
    %105 = tpu.concatenate %50, %68, %86, %104 in 1 : vector<16x8xf32>, vector<16x8xf32>, vector<16x8xf32>, vector<16x8xf32> -> vector<16x32xf32>
    %c0_34 = arith.constant 0 : index
    %c0_35 = arith.constant 0 : index
    %106 = vector.load %arg4[%c0_34, %c0_35] : memref<32x96xf32, #tpu.memory_space<vmem>>, vector<32x32xf32>
    %cst_36 = arith.constant dense<0.000000e+00> : vector<16x32xf32>
    %107 = tpu.matmul %105, %106, %cst_36 {dimension_numbers = #tpu.dot_dimension_numbers<[1], [0], [0], [1], [0, 0, 1, 1], [], []>} : vector<16x32xf32>, vector<32x32xf32>, vector<16x32xf32> -> vector<16x32xf32>
    %c3 = arith.constant 3 : index
    %c0_37 = arith.constant 0 : index
    %108 = vector.load %arg2[%c3, %c0_37] : memref<8x96xf32, #tpu.memory_space<vmem>>, vector<1x32xf32>
    %109 = vector.broadcast %108 : vector<1x32xf32> to vector<16x32xf32>
    %110 = arith.addf %107, %109 : vector<16x32xf32>
    %111 = arith.addf %26, %110 : vector<16x32xf32>
    %112 = vector.extract_strided_slice %1 {offsets = [0, 32], sizes = [1, 32], strides = [1, 1]} : vector<1x96xf32> to vector<1x32xf32>
    %113 = vector.extract_strided_slice %2 {offsets = [0, 32], sizes = [1, 32], strides = [1, 1]} : vector<1x96xf32> to vector<1x32xf32>
    %cst_38 = arith.constant dense<0.000000e+00> : vector<16xf32>
    %114 = vector.multi_reduction <add>, %111, %cst_38 [1] : vector<16x32xf32> to vector<16xf32>
    %115 = vector.shape_cast %114 : vector<16xf32> to vector<16x1xf32>
    %cst_39 = arith.constant 3.200000e+01 : f32
    %116 = vector.broadcast %cst_39 : f32 to vector<16x1xf32>
    %117 = arith.divf %115, %116 : vector<16x1xf32>
    %118 = vector.broadcast %117 : vector<16x1xf32> to vector<16x32xf32>
    %119 = arith.subf %111, %118 : vector<16x32xf32>
    %120 = arith.mulf %119, %119 : vector<16x32xf32>
    %cst_40 = arith.constant dense<0.000000e+00> : vector<16xf32>
    %121 = vector.multi_reduction <add>, %120, %cst_40 [1] : vector<16x32xf32> to vector<16xf32>
    %122 = vector.shape_cast %121 : vector<16xf32> to vector<16x1xf32>
    %cst_41 = arith.constant 3.200000e+01 : f32
    %123 = vector.broadcast %cst_41 : f32 to vector<16x1xf32>
    %124 = arith.divf %122, %123 : vector<16x1xf32>
    %125 = vector.broadcast %117 : vector<16x1xf32> to vector<16x32xf32>
    %126 = arith.subf %111, %125 : vector<16x32xf32>
    %cst_42 = arith.constant 9.99999974E-6 : f32
    %127 = vector.broadcast %cst_42 : f32 to vector<16x1xf32>
    %128 = arith.addf %124, %127 : vector<16x1xf32>
    %129 = math.rsqrt %128 : vector<16x1xf32>
    %130 = vector.broadcast %129 : vector<16x1xf32> to vector<16x32xf32>
    %131 = arith.mulf %126, %130 : vector<16x32xf32>
    %132 = vector.broadcast %112 : vector<1x32xf32> to vector<16x32xf32>
    %133 = arith.mulf %131, %132 : vector<16x32xf32>
    %134 = vector.broadcast %113 : vector<1x32xf32> to vector<16x32xf32>
    %135 = arith.addf %133, %134 : vector<16x32xf32>
    %c0_43 = arith.constant 0 : index
    %c32 = arith.constant 32 : index
    %136 = vector.load %arg4[%c0_43, %c32] : memref<32x96xf32, #tpu.memory_space<vmem>>, vector<32x64xf32>
    %cst_44 = arith.constant dense<0.000000e+00> : vector<16x64xf32>
    %137 = tpu.matmul %135, %136, %cst_44 {dimension_numbers = #tpu.dot_dimension_numbers<[1], [0], [0], [1], [0, 0, 1, 1], [], []>} : vector<16x32xf32>, vector<32x64xf32>, vector<16x64xf32> -> vector<16x64xf32>
    %c4 = arith.constant 4 : index
    %c0_45 = arith.constant 0 : index
    %138 = vector.load %arg2[%c4, %c0_45] : memref<8x96xf32, #tpu.memory_space<vmem>>, vector<1x64xf32>
    %139 = vector.broadcast %138 : vector<1x64xf32> to vector<16x64xf32>
    %140 = arith.addf %137, %139 : vector<16x64xf32>
    %141 = arith.mulf %140, %140 : vector<16x64xf32>
    %142 = arith.mulf %140, %141 : vector<16x64xf32>
    %cst_46 = arith.constant 4.471500e-02 : f32
    %143 = vector.broadcast %cst_46 : f32 to vector<16x64xf32>
    %144 = arith.mulf %143, %142 : vector<16x64xf32>
    %145 = arith.addf %140, %144 : vector<16x64xf32>
    %cst_47 = arith.constant 0.797884583 : f32
    %146 = vector.broadcast %cst_47 : f32 to vector<16x64xf32>
    %147 = arith.mulf %146, %145 : vector<16x64xf32>
    %148 = math.tanh %147 : vector<16x64xf32>
    %cst_48 = arith.constant 1.000000e+00 : f32
    %149 = vector.broadcast %cst_48 : f32 to vector<16x64xf32>
    %150 = arith.addf %149, %148 : vector<16x64xf32>
    %cst_49 = arith.constant 5.000000e-01 : f32
    %151 = vector.broadcast %cst_49 : f32 to vector<16x64xf32>
    %152 = arith.mulf %151, %150 : vector<16x64xf32>
    %153 = arith.mulf %140, %152 : vector<16x64xf32>
    %c0_50 = arith.constant 0 : index
    %c0_51 = arith.constant 0 : index
    %154 = vector.load %arg5[%c0_50, %c0_51] : memref<64x32xf32, #tpu.memory_space<vmem>>, vector<64x32xf32>
    %cst_52 = arith.constant dense<0.000000e+00> : vector<16x32xf32>
    %155 = tpu.matmul %153, %154, %cst_52 {dimension_numbers = #tpu.dot_dimension_numbers<[1], [0], [0], [1], [0, 0, 1, 1], [], []>} : vector<16x64xf32>, vector<64x32xf32>, vector<16x32xf32> -> vector<16x32xf32>
    %c3_53 = arith.constant 3 : index
    %c32_54 = arith.constant 32 : index
    %156 = vector.load %arg2[%c3_53, %c32_54] : memref<8x96xf32, #tpu.memory_space<vmem>>, vector<1x32xf32>
    %157 = vector.broadcast %156 : vector<1x32xf32> to vector<16x32xf32>
    %158 = arith.addf %155, %157 : vector<16x32xf32>
    %159 = arith.addf %135, %158 : vector<16x32xf32>
    %160 = vector.extract_strided_slice %1 {offsets = [0, 64], sizes = [1, 32], strides = [1, 1]} : vector<1x96xf32> to vector<1x32xf32>
    %161 = vector.extract_strided_slice %2 {offsets = [0, 64], sizes = [1, 32], strides = [1, 1]} : vector<1x96xf32> to vector<1x32xf32>
    %cst_55 = arith.constant dense<0.000000e+00> : vector<16xf32>
    %162 = vector.multi_reduction <add>, %159, %cst_55 [1] : vector<16x32xf32> to vector<16xf32>
    %163 = vector.shape_cast %162 : vector<16xf32> to vector<16x1xf32>
    %cst_56 = arith.constant 3.200000e+01 : f32
    %164 = vector.broadcast %cst_56 : f32 to vector<16x1xf32>
    %165 = arith.divf %163, %164 : vector<16x1xf32>
    %166 = vector.broadcast %165 : vector<16x1xf32> to vector<16x32xf32>
    %167 = arith.subf %159, %166 : vector<16x32xf32>
    %168 = arith.mulf %167, %167 : vector<16x32xf32>
    %cst_57 = arith.constant dense<0.000000e+00> : vector<16xf32>
    %169 = vector.multi_reduction <add>, %168, %cst_57 [1] : vector<16x32xf32> to vector<16xf32>
    %170 = vector.shape_cast %169 : vector<16xf32> to vector<16x1xf32>
    %cst_58 = arith.constant 3.200000e+01 : f32
    %171 = vector.broadcast %cst_58 : f32 to vector<16x1xf32>
    %172 = arith.divf %170, %171 : vector<16x1xf32>
    %173 = vector.broadcast %165 : vector<16x1xf32> to vector<16x32xf32>
    %174 = arith.subf %159, %173 : vector<16x32xf32>
    %cst_59 = arith.constant 9.99999974E-6 : f32
    %175 = vector.broadcast %cst_59 : f32 to vector<16x1xf32>
    %176 = arith.addf %172, %175 : vector<16x1xf32>
    %177 = math.rsqrt %176 : vector<16x1xf32>
    %178 = vector.broadcast %177 : vector<16x1xf32> to vector<16x32xf32>
    %179 = arith.mulf %174, %178 : vector<16x32xf32>
    %180 = vector.broadcast %160 : vector<1x32xf32> to vector<16x32xf32>
    %181 = arith.mulf %179, %180 : vector<16x32xf32>
    %182 = vector.broadcast %161 : vector<1x32xf32> to vector<16x32xf32>
    %183 = arith.addf %181, %182 : vector<16x32xf32>
    %c5 = arith.constant 5 : index
    %c0_60 = arith.constant 0 : index
    %184 = vector.load %arg2[%c5, %c0_60] : memref<8x96xf32, #tpu.memory_space<vmem>>, vector<1x32xf32>
    %c6 = arith.constant 6 : index
    %c0_61 = arith.constant 0 : index
    %185 = vector.load %arg2[%c6, %c0_61] : memref<8x96xf32, #tpu.memory_space<vmem>>, vector<1x32xf32>
    %c3_62 = arith.constant 3 : index
    %c64 = arith.constant 64 : index
    %186 = vector.load %arg2[%c3_62, %c64] : memref<8x96xf32, #tpu.memory_space<vmem>>, vector<1x1xf32>
    %c3_63 = arith.constant 3 : index
    %c65 = arith.constant 65 : index
    %187 = vector.load %arg2[%c3_63, %c65] : memref<8x96xf32, #tpu.memory_space<vmem>>, vector<1x1xf32>
    %188 = vector.broadcast %184 : vector<1x32xf32> to vector<16x32xf32>
    %189 = arith.mulf %183, %188 : vector<16x32xf32>
    %cst_64 = arith.constant dense<0.000000e+00> : vector<16xf32>
    %190 = vector.multi_reduction <add>, %189, %cst_64 [1] : vector<16x32xf32> to vector<16xf32>
    %191 = vector.shape_cast %190 : vector<16xf32> to vector<16x1xf32>
    %192 = vector.broadcast %186 : vector<1x1xf32> to vector<16x1xf32>
    %193 = arith.addf %191, %192 : vector<16x1xf32>
    %194 = vector.broadcast %185 : vector<1x32xf32> to vector<16x32xf32>
    %195 = arith.mulf %183, %194 : vector<16x32xf32>
    %cst_65 = arith.constant dense<0.000000e+00> : vector<16xf32>
    %196 = vector.multi_reduction <add>, %195, %cst_65 [1] : vector<16x32xf32> to vector<16xf32>
    %197 = vector.shape_cast %196 : vector<16xf32> to vector<16x1xf32>
    %198 = vector.broadcast %187 : vector<1x1xf32> to vector<16x1xf32>
    %199 = arith.addf %197, %198 : vector<16x1xf32>
    %cst_66 = arith.constant 0.000000e+00 : f32
    %200 = vector.broadcast %cst_66 : f32 to vector<16x126xf32>
    %201 = tpu.concatenate %193, %199, %200 in 1 : vector<16x1xf32>, vector<16x1xf32>, vector<16x126xf32> -> vector<16x128xf32>
    %c0_67 = arith.constant 0 : index
    %c0_68 = arith.constant 0 : index
    %202 = vector.load %arg7[%c0_67, %c0_68] : memref<16x128xf32, #tpu.memory_space<vmem>>, vector<16x128xf32>
    tpu.vector_store %arg7[%c0_67, %c0_68], %201 {strides = array<i32>} : memref<16x128xf32, #tpu.memory_space<vmem>>, vector<16x128xf32>,
    %203 = tpu.iota {dimensions = array<i32: 0>} : vector<8x1xi32>
    %204 = vector.extract_strided_slice %193 {offsets = [0, 0], sizes = [8, 1], strides = [1, 1]} : vector<16x1xf32> to vector<8x1xf32>
    %205 = vector.extract_strided_slice %199 {offsets = [0, 0], sizes = [8, 1], strides = [1, 1]} : vector<16x1xf32> to vector<8x1xf32>
    %c0_69 = arith.constant 0 : index
    %c0_70 = arith.constant 0 : index
    %206 = memref.load %arg6[%c0_69, %c0_70] : memref<2x2xi32, #tpu.memory_space<smem>>
    %207 = vector.shape_cast %204 : vector<8x1xf32> to vector<1x8x1xf32>
    %cst_71 = arith.constant dense<0xFF800000> : vector<1xf32>
    %208 = vector.multi_reduction <maximumf>, %207, %cst_71 [1, 2] : vector<1x8x1xf32> to vector<1xf32>
    %209 = vector.shape_cast %208 : vector<1xf32> to vector<1x1x1xf32>
    %210 = vector.extract %209[0, 0, 0] : f32 from vector<1x1x1xf32>
    %211 = vector.broadcast %210 : f32 to vector<8x1xf32>
    %212 = arith.subf %204, %211 : vector<8x1xf32>
    %213 = math.exp %212 : vector<8x1xf32>
    %214 = vector.shape_cast %213 : vector<8x1xf32> to vector<1x8x1xf32>
    %cst_72 = arith.constant dense<0.000000e+00> : vector<1xf32>
    %215 = vector.multi_reduction <add>, %214, %cst_72 [1, 2] : vector<1x8x1xf32> to vector<1xf32>
    %216 = vector.shape_cast %215 : vector<1xf32> to vector<1x1x1xf32>
    %217 = vector.extract %216[0, 0, 0] : f32 from vector<1x1x1xf32>
    %218 = math.log %217 : f32
    %219 = arith.addf %210, %218 : f32
    %220 = vector.broadcast %206 : i32 to vector<8x1xi32>
    %221 = arith.cmpi eq, %203, %220 : vector<8x1xi32>
    %cst_73 = arith.constant 0.000000e+00 : f32
    %222 = vector.broadcast %cst_73 : f32 to vector<8x1xf32>
    %223 = arith.select %221, %204, %222 : vector<8x1xi1>, vector<8x1xf32>
    %224 = vector.shape_cast %223 : vector<8x1xf32> to vector<1x8x1xf32>
    %cst_74 = arith.constant dense<0.000000e+00> : vector<1xf32>
    %225 = vector.multi_reduction <add>, %224, %cst_74 [1, 2] : vector<1x8x1xf32> to vector<1xf32>
    %226 = vector.shape_cast %225 : vector<1xf32> to vector<1x1x1xf32>
    %227 = vector.extract %226[0, 0, 0] : f32 from vector<1x1x1xf32>
    %c-1_i32 = arith.constant -1 : i32
    %228 = arith.cmpi ne, %206, %c-1_i32 : i32
    %cst_75 = arith.constant 1.000000e+00 : f32
    %cst_76 = arith.constant 0.000000e+00 : f32
    %229 = arith.select %228, %cst_75, %cst_76 : f32
    %230 = arith.subf %219, %227 : f32
    %231 = arith.mulf %230, %229 : f32
    %c1_77 = arith.constant 1 : index
    %c0_78 = arith.constant 0 : index
    %232 = memref.load %arg6[%c1_77, %c0_78] : memref<2x2xi32, #tpu.memory_space<smem>>
    %233 = vector.shape_cast %205 : vector<8x1xf32> to vector<1x8x1xf32>
    %cst_79 = arith.constant dense<0xFF800000> : vector<1xf32>
    %234 = vector.multi_reduction <maximumf>, %233, %cst_79 [1, 2] : vector<1x8x1xf32> to vector<1xf32>
    %235 = vector.shape_cast %234 : vector<1xf32> to vector<1x1x1xf32>
    %236 = vector.extract %235[0, 0, 0] : f32 from vector<1x1x1xf32>
    %237 = vector.broadcast %236 : f32 to vector<8x1xf32>
    %238 = arith.subf %205, %237 : vector<8x1xf32>
    %239 = math.exp %238 : vector<8x1xf32>
    %240 = vector.shape_cast %239 : vector<8x1xf32> to vector<1x8x1xf32>
    %cst_80 = arith.constant dense<0.000000e+00> : vector<1xf32>
    %241 = vector.multi_reduction <add>, %240, %cst_80 [1, 2] : vector<1x8x1xf32> to vector<1xf32>
    %242 = vector.shape_cast %241 : vector<1xf32> to vector<1x1x1xf32>
    %243 = vector.extract %242[0, 0, 0] : f32 from vector<1x1x1xf32>
    %244 = math.log %243 : f32
    %245 = arith.addf %236, %244 : f32
    %246 = vector.broadcast %232 : i32 to vector<8x1xi32>
    %247 = arith.cmpi eq, %203, %246 : vector<8x1xi32>
    %cst_81 = arith.constant 0.000000e+00 : f32
    %248 = vector.broadcast %cst_81 : f32 to vector<8x1xf32>
    %249 = arith.select %247, %205, %248 : vector<8x1xi1>, vector<8x1xf32>
    %250 = vector.shape_cast %249 : vector<8x1xf32> to vector<1x8x1xf32>
    %cst_82 = arith.constant dense<0.000000e+00> : vector<1xf32>
    %251 = vector.multi_reduction <add>, %250, %cst_82 [1, 2] : vector<1x8x1xf32> to vector<1xf32>
    %252 = vector.shape_cast %251 : vector<1xf32> to vector<1x1x1xf32>
    %253 = vector.extract %252[0, 0, 0] : f32 from vector<1x1x1xf32>
    %c-1_i32_83 = arith.constant -1 : i32
    %254 = arith.cmpi ne, %232, %c-1_i32_83 : i32
    %cst_84 = arith.constant 1.000000e+00 : f32
    %cst_85 = arith.constant 0.000000e+00 : f32
    %255 = arith.select %254, %cst_84, %cst_85 : f32
    %256 = arith.subf %245, %253 : f32
    %257 = arith.mulf %256, %255 : f32
    %cst_86 = arith.constant 0.000000e+00 : f32
    %258 = arith.addf %cst_86, %231 : f32
    %cst_87 = arith.constant 0.000000e+00 : f32
    %259 = arith.addf %cst_87, %229 : f32
    %cst_88 = arith.constant 0.000000e+00 : f32
    %260 = arith.addf %cst_88, %257 : f32
    %cst_89 = arith.constant 0.000000e+00 : f32
    %261 = arith.addf %cst_89, %255 : f32
    %262 = vector.extract_strided_slice %193 {offsets = [8, 0], sizes = [8, 1], strides = [1, 1]} : vector<16x1xf32> to vector<8x1xf32>
    %263 = vector.extract_strided_slice %199 {offsets = [8, 0], sizes = [8, 1], strides = [1, 1]} : vector<16x1xf32> to vector<8x1xf32>
    %c0_90 = arith.constant 0 : index
    %c1_91 = arith.constant 1 : index
    %264 = memref.load %arg6[%c0_90, %c1_91] : memref<2x2xi32, #tpu.memory_space<smem>>
    %265 = vector.shape_cast %262 : vector<8x1xf32> to vector<1x8x1xf32>
    %cst_92 = arith.constant dense<0xFF800000> : vector<1xf32>
    %266 = vector.multi_reduction <maximumf>, %265, %cst_92 [1, 2] : vector<1x8x1xf32> to vector<1xf32>
    %267 = vector.shape_cast %266 : vector<1xf32> to vector<1x1x1xf32>
    %268 = vector.extract %267[0, 0, 0] : f32 from vector<1x1x1xf32>
    %269 = vector.broadcast %268 : f32 to vector<8x1xf32>
    %270 = arith.subf %262, %269 : vector<8x1xf32>
    %271 = math.exp %270 : vector<8x1xf32>
    %272 = vector.shape_cast %271 : vector<8x1xf32> to vector<1x8x1xf32>
    %cst_93 = arith.constant dense<0.000000e+00> : vector<1xf32>
    %273 = vector.multi_reduction <add>, %272, %cst_93 [1, 2] : vector<1x8x1xf32> to vector<1xf32>
    %274 = vector.shape_cast %273 : vector<1xf32> to vector<1x1x1xf32>
    %275 = vector.extract %274[0, 0, 0] : f32 from vector<1x1x1xf32>
    %276 = math.log %275 : f32
    %277 = arith.addf %268, %276 : f32
    %278 = vector.broadcast %264 : i32 to vector<8x1xi32>
    %279 = arith.cmpi eq, %203, %278 : vector<8x1xi32>
    %cst_94 = arith.constant 0.000000e+00 : f32
    %280 = vector.broadcast %cst_94 : f32 to vector<8x1xf32>
    %281 = arith.select %279, %262, %280 : vector<8x1xi1>, vector<8x1xf32>
    %282 = vector.shape_cast %281 : vector<8x1xf32> to vector<1x8x1xf32>
    %cst_95 = arith.constant dense<0.000000e+00> : vector<1xf32>
    %283 = vector.multi_reduction <add>, %282, %cst_95 [1, 2] : vector<1x8x1xf32> to vector<1xf32>
    %284 = vector.shape_cast %283 : vector<1xf32> to vector<1x1x1xf32>
    %285 = vector.extract %284[0, 0, 0] : f32 from vector<1x1x1xf32>
    %c-1_i32_96 = arith.constant -1 : i32
    %286 = arith.cmpi ne, %264, %c-1_i32_96 : i32
    %cst_97 = arith.constant 1.000000e+00 : f32
    %cst_98 = arith.constant 0.000000e+00 : f32
    %287 = arith.select %286, %cst_97, %cst_98 : f32
    %288 = arith.subf %277, %285 : f32
    %289 = arith.mulf %288, %287 : f32
    %c1_99 = arith.constant 1 : index
    %c1_100 = arith.constant 1 : index
    %290 = memref.load %arg6[%c1_99, %c1_100] : memref<2x2xi32, #tpu.memory_space<smem>>
    %291 = vector.shape_cast %263 : vector<8x1xf32> to vector<1x8x1xf32>
    %cst_101 = arith.constant dense<0xFF800000> : vector<1xf32>
    %292 = vector.multi_reduction <maximumf>, %291, %cst_101 [1, 2] : vector<1x8x1xf32> to vector<1xf32>
    %293 = vector.shape_cast %292 : vector<1xf32> to vector<1x1x1xf32>
    %294 = vector.extract %293[0, 0, 0] : f32 from vector<1x1x1xf32>
    %295 = vector.broadcast %294 : f32 to vector<8x1xf32>
    %296 = arith.subf %263, %295 : vector<8x1xf32>
    %297 = math.exp %296 : vector<8x1xf32>
    %298 = vector.shape_cast %297 : vector<8x1xf32> to vector<1x8x1xf32>
    %cst_102 = arith.constant dense<0.000000e+00> : vector<1xf32>
    %299 = vector.multi_reduction <add>, %298, %cst_102 [1, 2] : vector<1x8x1xf32> to vector<1xf32>
    %300 = vector.shape_cast %299 : vector<1xf32> to vector<1x1x1xf32>
    %301 = vector.extract %300[0, 0, 0] : f32 from vector<1x1x1xf32>
    %302 = math.log %301 : f32
    %303 = arith.addf %294, %302 : f32
    %304 = vector.broadcast %290 : i32 to vector<8x1xi32>
    %305 = arith.cmpi eq, %203, %304 : vector<8x1xi32>
    %cst_103 = arith.constant 0.000000e+00 : f32
    %306 = vector.broadcast %cst_103 : f32 to vector<8x1xf32>
    %307 = arith.select %305, %263, %306 : vector<8x1xi1>, vector<8x1xf32>
    %308 = vector.shape_cast %307 : vector<8x1xf32> to vector<1x8x1xf32>
    %cst_104 = arith.constant dense<0.000000e+00> : vector<1xf32>
    %309 = vector.multi_reduction <add>, %308, %cst_104 [1, 2] : vector<1x8x1xf32> to vector<1xf32>
    %310 = vector.shape_cast %309 : vector<1xf32> to vector<1x1x1xf32>
    %311 = vector.extract %310[0, 0, 0] : f32 from vector<1x1x1xf32>
    %c-1_i32_105 = arith.constant -1 : i32
    %312 = arith.cmpi ne, %290, %c-1_i32_105 : i32
    %cst_106 = arith.constant 1.000000e+00 : f32
    %cst_107 = arith.constant 0.000000e+00 : f32
    %313 = arith.select %312, %cst_106, %cst_107 : f32
    %314 = arith.subf %303, %311 : f32
    %315 = arith.mulf %314, %313 : f32
    %316 = arith.addf %258, %289 : f32
    %317 = arith.addf %259, %287 : f32
    %318 = arith.addf %260, %315 : f32
    %319 = arith.addf %261, %313 : f32
    %320 = arith.divf %316, %317 : f32
    %321 = arith.divf %318, %319 : f32
    %322 = arith.addf %320, %321 : f32
    %cst_108 = arith.constant 5.000000e-01 : f32
    %323 = arith.mulf %cst_108, %322 : f32
    %c0_109 = arith.constant 0 : index
    %c0_110 = arith.constant 0 : index
    %324 = memref.load %arg8[%c0_109, %c0_110] : memref<1x1xf32, #tpu.memory_space<smem>>
    memref.store %323, %arg8[%c0_109, %c0_110] : memref<1x1xf32, #tpu.memory_space<smem>>
    return
  }
}

</mosaic_0001>

<bundles_post_ra>
// kernel: squeeze.7
= control target key start
LH: loop header
LB: loop body
LE: loop exit
PB: predicated region body
PF: predicated region fallthrough
CT: control target
= control target key end

     0   :  { %s85_s0 = inlined_call_operand.vmem [shape: f32[16], index: 0, kind: input, shape index: {}]   ;;  %s86_s1 = inlined_call_operand.hbm [shape: f32[2,8], index: 1, kind: output, shape index: {}]  }
   0x1   :  { %v5_v0 = vld [vmem:[%s85_s0] sm:$0x1] }
   0x2   :  { %2 = vsyncpa [#allocation1], 0  ;;  %6 = vst [vmem:[#allocation3] sm:$0x1] %v5_v0  ;;  %vm8_vm0 = vcmask 64512   ;;  %s58_s0 = smov 120  }
   0x3   :  { %s59_s8 = smov [#allocation0]  }
   0x4   :  { %s26_s9 = sshll.u32 %s59_s8, 4  ;;  %s27_s9 = int_to_ptr.vmem [resolvable:$true] %s26_s9 }
   0x5   :  { %s34_s10 = scalar_lea.vmem %s27_s9, 32  ;;  %p39_p1 = scmp.lt.s32.totalorder %s27_s9, %s27_s9 }
   0x6   :  { %p35_p0 = scmp.ne.s32.totalorder %s27_s9, %s34_s10  ;;  %p40_p2 = scmp.lt.s32.totalorder %s34_s10, %s34_s10 }
   0x8   :  { %p41_p3 = por %p40_p2, %p39_p1 }
   0x9   :  { %v10_v1 = vld [vmem:[#allocation3] sm:$0x1]  }
   0xa   :  { %v7_v2 = vld [vmem:[#allocation3] sm:$0x1]   ;;  %11 = vrot.lane.b32.xlu0 %v10_v1, %s58_s0  ;;  %p42_p4 = pnand %p41_p3, %p35_p0 }
   0xb   :  { %9 = vst.msk [vmem:[#allocation2] sm:$0x1] %vm8_vm0, %v7_v2  }
  0x7c   :  { %v12_v3 = vpop.permute.xlu0 %11  }
  0x7d   :  { %15 = vst.msk [vmem:[#allocation2 + $0x1] sm:$0x1] %vm8_vm0, %v12_v3  }
  0x84   :  { %v19_v4 = vld [vmem:[#allocation2] sm:$0x3] }
  0x85   :  { %21 = vst [vmem:[#allocation0] sm:$0x3] %v19_v4 }
  0x86   :  { %45 = shalt.err (!%p42_p4)
}
  0x87   :  { %s46_s13 = scalar_lea.hbm %s86_s1, 32 }
  0x88   :  { %p47_p5 = scmp.ne.s32.totalorder %s86_s1, %s46_s13  ;;  %p50_p6 = scmp.lt.u32.totalorder %s46_s13, %s86_s1 }
  0x8a   :  { %p52_p7 = pnand %p50_p6, %p47_p5 }
  0x8c   :  { %55 = shalt.err (!%p52_p7)
}
  0x8d   :  { %29 = dma.vmem_to_hbm [thread:$0]  %s27_s9, 32, %s86_s1, [#allocation1]  }
  0x8e   :  { %56 = dma.done.wait [#allocation1], 32  }
  0x8f   :  { %57 = vsyncadd [#allocation1], 4294967264 }
  0x90   :  { %31 = vsyncpa [#allocation1], 1 }

// kernel: forward.1
= control target key start
LH: loop header
LB: loop body
LE: loop exit
PB: predicated region body
PF: predicated region fallthrough
CT: control target
= control target key end

     0   :  { %14 = vsyncpa [#allocation4], 0  ;;  %s2682_s0 = inlined_call_operand.vmem [shape: f32[16,32], index: 0, kind: input, shape index: {}]   ;;  %s2683_s1 = inlined_call_operand.vmem [shape: f32[16,16], index: 1, kind: input, shape index: {}]   ;;  %s2684_s2 = inlined_call_operand.vmem [shape: f32[8,96], index: 2, kind: input, shape index: {}]   ;;  %s2685_s3 = inlined_call_operand.vmem [shape: f32[32,96], index: 3, kind: input, shape index: {}]   ;;  %s2686_s4 = inlined_call_operand.vmem [shape: f32[32,96], index: 4, kind: input, shape index: {}]   ;;  %s2687_s5 = inlined_call_operand.vmem [shape: f32[64,32], index: 5, kind: input, shape index: {}]   ;;  %s2688_s6 = inlined_call_operand.vmem [shape: s32[2,2], index: 6, kind: input, shape index: {}]   ;;  %s2689_s7 = inlined_call_operand.vmem [shape: f32[16,128], index: 7, kind: output, shape index: {0}]   ;;  %s2690_s8 = inlined_call_operand.hbm [shape: f32[1,1], index: 8, kind: output, shape index: {1}]  }
   0x1   :  { %15 = vsyncpa [#allocation3], 0  ;;  %s34_s29 = sshll.u32 %s2688_s6, 4  ;;  %s35_s29 = int_to_ptr.vmem [resolvable:$true] %s34_s29 }
   0x2   :  { %s2184_s30 = scalar_lea.vmem %s35_s29, 32  ;;  %p2189_p1 = scmp.lt.s32.totalorder %s35_s29, %s35_s29 }
   0x3   :  { %p2185_p0 = scmp.ne.s32.totalorder %s35_s29, %s2184_s30  ;;  %p2190_p2 = scmp.lt.s32.totalorder %s2184_s30, %s2184_s30 }
   0x5   :  { %p2191_p3 = por %p2190_p2, %p2189_p1 }
   0x7   :  { %p2192_p4 = pnand %p2191_p3, %p2185_p0 }
   0x9   :  { %2195 = shalt.err (!%p2192_p4)
}
   0xa   :  { %s2210_s9 = smov [#allocation2]  }
   0xb   :  { %37 = dma.vmem_to_smem %s35_s29, 32, %s2210_s9, [#allocation4]  }
   0xc   :  { %2206 = dma.done.wait [#allocation4], 32  }
   0xd   :  { %2207 = vsyncadd [#allocation4], 4294967264 }
   0xe   :  { %41 = sfence }
   0xf   :  { %v42_v0 = vld [vmem:[%s2682_s0] sm:$0xff]  ;;  %vm46_vm0 = vcmask 261120   ;;  %v43_v1 = vld [vmem:[%s2682_s0 + $0x8] sm:$0xff]  ;;  %v88_v16 = vld [vmem:[%s2685_s3 + $0x10] sm:$0xff]  ;;  %vm184_vm1 = vcmask 64512   ;;  %s2211_s25 = smov 88  }
  0x10   :  { %v47_v2 = vsel %vm46_vm0, %v42_v0, 0.0  ;;  %v50_v3 = vsel %vm46_vm0, %v43_v1, 0.0  ;;  %v86_v14 = vld [vmem:[%s2685_s3] sm:$0xff]  ;;  %v87_v15 = vld [vmem:[%s2685_s3 + $0x8] sm:$0xff]  ;;  %v89_v18 = vld [vmem:[%s2685_s3 + $0x18] sm:$0xff]  ;;  %s2212_s26 = smov 96  }
  0x11   :  { %48 = vadd.xlane.f32.xlu0 %v47_v2  ;;  %v1933_v17 = vpack.c.bf16 %v87_v15, %v86_v14  ;;  %v1937_v19 = vpack.c.bf16 %v89_v18, %v88_v16  ;;  %v2300_v27 = vld [vmem:[%s2684_s2] ss:$0 sm:$0xff]  ;;  %v2305_v29 = vld [vmem:[%s2684_s2 + $0x1] ss:$0 sm:$0xff]  ;;  %v1725_v36 = vld [vmem:[%s2684_s2 + $0x2] ss:$0 sm:$0xff] }
  0x12   :  { %s2213_s27 = smov 120   ;;  %vm2339_vm2 = vmpackc.low %vm184_vm1, %vm184_vm1  ;;  %v2358_v54 = vld [vmem:[%s2683_s1 + $0x8] sm:$0xff]  ;;  %v2363_v57 = vld [vmem:[%s2683_s1] sm:$0xff]  ;;  %vm272_vm3 = vcmask 130048   ;;  %s2214_s1 = smov 56   ;;  %vm1022_vm4 = vcmask 195584  }
  0x13   :  { %1934 = vmatprep.subr.bf16.mxu1 %v1933_v17  ;;  %s2215_s10 = smov 64   ;;  %s2216_s11 = smov 80   ;;  %vm1287_vm5 = vcmask 523264   ;;  %vm1464_vm6 = vcmask 531968   ;;  %vm1453_vm7 = vcmask 7168   ;;  %vm1520_vm9 = vcmask 540168  }
  0x14   :  { %1936 = vmatpush3.bf16.msra.mxu1 %v1933_v17  ;;  %s2217_s12 = smov 112   ;;  %s2218_s6 = smov 48   ;;  %vm1456_vm13 = vcmask 15360  }
  0x15   :  { %51 = vadd.xlane.f32.xlu0 %v50_v3  ;;  %1938 = vmatprep.subr.bf16.mxu1 %v1937_v19  ;;  %s2219_s0 = smov 104   ;;  %s2220_s13 = smov 72  }
  0x16   :  { %s2221_s14 = smov 40   ;;  %s2222_s15 = smov 8  }
  0x17   :  { %s2223_s16 = smov 16   ;;  %s2224_s24 = smov 24  }
  0x18   :  { %1940 = vmatpush3.bf16.msra.mxu1 %v1937_v19  ;;  %s2545_s22 = sld [smem:[#allocation2]]  ;;  %s2628_s21 = sld [smem:[#allocation2 + $0x81]] }
  0x1e   :  { %p1515_p5 = scmp.ne.s32.totalorder %s2545_s22, 4294967295  ;;  %p1685_p7 = scmp.ne.s32.totalorder %s2628_s21, 4294967295 }
  0x9e   :  { %v49_v4 = vpop.xlane.xlu0 %48 }
  0x9f   :  { %v54_v5 = vmul.f32 0.03125, %v49_v4 }
  0xa1   :  { %v56_v6 = vsub.f32 %v42_v0, %v54_v5 }
  0xa2   :  { %v52_v7 = vpop.xlane.xlu0 %51 }
  0xa3   :  { %v55_v8 = vmul.f32 0.03125, %v52_v7  ;;  %v58_v9 = vmul.f32 %v56_v6, %v56_v6 }
  0xa5   :  { %v57_v10 = vsub.f32 %v43_v1, %v55_v8  ;;  %v60_v11 = vsel %vm46_vm0, %v58_v9, 0.0 }
  0xa6   :  { %61 = vadd.xlane.f32.xlu1 %v60_v11 }
  0xa7   :  { %v59_v12 = vmul.f32 %v57_v10, %v57_v10 }
  0xa9   :  { %v63_v13 = vsel %vm46_vm0, %v59_v12, 0.0 }
  0xaa   :  { %64 = vadd.xlane.f32.xlu1 %v63_v13 }
 0x133   :  { %v62_v20 = vpop.xlane.xlu1 %61 }
 0x134   :  { %v66_v21 = vmul.f32 0.03125, %v62_v20 }
 0x136   :  { %v68_v22 = vadd.f32 1e-05, %v66_v21 }
 0x137   :  { %v65_v23 = vpop.xlane.xlu1 %64 }
 0x138   :  { %2116 = vrsqrt.f32 %v68_v22  ;;  %v67_v24 = vmul.f32 0.03125, %v65_v23 }
 0x13a   :  { %v69_v25 = vadd.f32 1e-05, %v67_v24 }
 0x13c   :  { %2118 = vrsqrt.f32 %v69_v25 }
 0x142   :  { %v2117_v26 = vpop.eup %2116 }
 0x143   :  { %v72_v28 = vmul.f32 %v2117_v26, %v56_v6 }
 0x145   :  { %v78_v30 = vmul.f32 %v2300_v27, %v72_v28 }
 0x146   :  { %v2119_v31 = vpop.eup %2118 }
 0x147   :  { %v2309_v32 = vadd.f32 %v2305_v29, %v78_v30  ;;  %v73_v33 = vmul.f32 %v2119_v31, %v57_v10 }
 0x149   :  { %1833 = vmatprep.mubr.msk.f32.mxu1 %vm46_vm0, %v2309_v32  ;;  %v79_v34 = vmul.f32 %v2300_v27, %v73_v33 }
 0x14b   :  { %v2315_v35 = vadd.f32 %v2305_v29, %v79_v34 }
 0x14d   :  { %1834 = vmatmul.mubr.msk.f32.vlgmr.msra.gmra.mrb[0].mxu1 %vm46_vm0, %v2315_v35 }
 0x220   :  { %v1835_v37 = vpop.f32.mrb[0].mxu1 }
 0x221   :  { %v2322_v38 = vadd.f32 %v1835_v37, %v1725_v36  ;;  %v167_v39 = vpop.f32.mrb[1].mxu1 }
 0x222   :  { %v2324_v40 = vadd.f32 %v1725_v36, %v167_v39 }
 0x224   :  { %1840 = vmatprep.mubr.msk.f32.mxu1 %vm184_vm1, %v2324_v40  ;;  %v2330_v41 = vpack.i.bf16 %v2322_v38, %v2324_v40 }
 0x226   :  { %2072 = vrot.lane.b32.xlu1 %v2330_v41, %s2211_s25  ;;  %2067 = vrot.lane.b32.xlu0 %v2330_v41, %s2212_s26 }
 0x22a   :  { %382 = vrot.lane.b32.xlu1 %v2324_v40, %s2213_s27 }
 0x22e   :  { %384 = vrot.lane.b32.xlu1 %v2322_v38, %s2213_s27  ;;  %s2578_s27 = sld [smem:[#allocation2 + $0x80]] }
 0x234   :  { %p1571_p8 = scmp.ne.s32.totalorder %s2578_s27, 4294967295 }
 0x298   :  { %v2073_v42 = vpop.permute.xlu1 %2072  ;;  %v2068_v43 = vpop.permute.xlu0 %2067 }
 0x299   :  { %v2075_v44 = vunpack.i.h.bf16 %v2073_v42  ;;  %v2074_v45 = vunpack.i.l.bf16 %v2073_v42  ;;  %v2070_v46 = vunpack.i.h.bf16 %v2068_v43  ;;  %v2069_v47 = vunpack.i.l.bf16 %v2068_v43 }
 0x29b   :  { %v1941_v49 = vpack.c.bf16 %v2070_v46, %v2069_v47  ;;  %v1951_v50 = vpack.c.bf16 %v2075_v44, %v2074_v45 }
 0x29c   :  { %v383_v51 = vpop.permute.xlu1 %382 }
 0x29d   :  { %1943 = vmatprep.subr.msk.bf16.mxu1 %vm2339_vm2, %v1941_v49 }
 0x29e   :  { %1946 = vmatpush3.bf16.xpose.msk.msra.mxu1 %vm2339_vm2, %v1941_v49 }
 0x29f   :  { %1953 = vmatprep.subr.msk.bf16.mxu1 %vm2339_vm2, %v1951_v50 }
 0x2a0   :  { %v385_v52 = vpop.permute.xlu1 %384 }
 0x2a5   :  { %1841 = vmatmul.mubr.msk.f32.vlgmr.msra.gmra.mrb[2].mxu1 %vm184_vm1, %v2322_v38 }
 0x2a6   :  { %1956 = vmatpush3.bf16.xpose.msk.msra.mxu1 %vm2339_vm2, %v1951_v50  ;;  %1854 = vmatprep.mubr.msk.f32.mxu1 %vm184_vm1, %v383_v51 }
 0x2ad   :  { %1855 = vmatmul.mubr.msk.f32.vlgmr.msra.gmra.mrb[4].mxu1 %vm184_vm1, %v385_v52 }
 0x378   :  { %v1842_v53 = vpop.f32.mrb[2].mxu1 }
 0x379   :  { %v269_v55 = vmul.f32 0.35355338, %v1842_v53  ;;  %v259_v56 = vpop.f32.mrb[3].mxu1 }
 0x37a   :  { %v268_v58 = vmul.f32 0.35355338, %v259_v56 }
 0x37b   :  { %v271_v59 = vadd.f32 %v269_v55, %v2358_v54 }
 0x37c   :  { %v270_v60 = vadd.f32 %v268_v58, %v2363_v57 }
 0x37d   :  { %v276_v61 = vsel %vm272_vm3, %v271_v59, -inf }
 0x37e   :  { %277 = vmax.xlane.f32.xlu1 %v276_v61  ;;  %v273_v62 = vsel %vm272_vm3, %v270_v60, -inf }
 0x37f   :  { %274 = vmax.xlane.f32.xlu0 %v273_v62 }
 0x380   :  { %v1856_v63 = vpop.f32.mrb[4].mxu1 }
 0x381   :  { %v464_v0 = vpop.f32.mrb[5].mxu1  ;;  %v474_v1 = vmul.f32 0.35355338, %v1856_v63 }
 0x382   :  { %v473_v2 = vmul.f32 0.35355338, %v464_v0 }
 0x383   :  { %v476_v5 = vadd.f32 %v474_v1, %v2358_v54 }
 0x384   :  { %v475_v3 = vadd.f32 %v473_v2, %v2363_v57 }
 0x385   :  { %v480_v6 = vsel %vm272_vm3, %v476_v5, -inf }
 0x386   :  { %v477_v4 = vsel %vm272_vm3, %v475_v3, -inf }
 0x387   :  { %478 = vmax.xlane.f32.xlu0 %v477_v4 }
 0x38b   :  { %481 = vmax.xlane.f32.xlu0 %v480_v6 }
 0x40b   :  { %v278_v7 = vpop.xlane.xlu1 %277 }
 0x40c   :  { %v280_v8 = vsub.f32 %v271_v59, %v278_v7  ;;  %v275_v9 = vpop.xlane.xlu0 %274 }
 0x40d   :  { %v279_v10 = vsub.f32 %v270_v60, %v275_v9 }
 0x40e   :  { %v283_v11 = vmul.f32 1.442695, %v280_v8 }
 0x40f   :  { %v281_v12 = vmul.f32 1.442695, %v279_v10 }
 0x410   :  { %2120 = vpow2.f32 %v283_v11 }
 0x411   :  { %2122 = vpow2.f32 %v281_v12 }
 0x414   :  { %v479_v13 = vpop.xlane.xlu0 %478 }
 0x415   :  { %v483_v14 = vsub.f32 %v475_v3, %v479_v13 }
 0x417   :  { %v485_v15 = vmul.f32 1.442695, %v483_v14 }
 0x418   :  { %v482_v16 = vpop.xlane.xlu0 %481 }
 0x419   :  { %2124 = vpow2.f32 %v485_v15  ;;  %v484_v17 = vsub.f32 %v476_v5, %v482_v16 }
 0x41a   :  { %v2121_v18 = vpop.eup %2120 }
 0x41b   :  { %v2123_v19 = vpop.eup %2122  ;;  %v487_v20 = vmul.f32 1.442695, %v484_v17  ;;  %v288_v21 = vsel %vm272_vm3, %v2121_v18, 0.0 }
 0x41c   :  { %289 = vadd.xlane.f32.xlu1 %v288_v21  ;;  %v285_v22 = vsel %vm272_vm3, %v2123_v19, 0.0 }
 0x41d   :  { %2126 = vpow2.f32 %v487_v20  ;;  %286 = vadd.xlane.f32.xlu0 %v285_v22 }
 0x423   :  { %v2125_v23 = vpop.eup %2124 }
 0x424   :  { %v489_v24 = vsel %vm272_vm3, %v2125_v23, 0.0 }
 0x425   :  { %490 = vadd.xlane.f32.xlu0 %v489_v24 }
 0x427   :  { %v2127_v25 = vpop.eup %2126 }
 0x428   :  { %v492_v26 = vsel %vm272_vm3, %v2127_v25, 0.0 }
 0x429   :  { %493 = vadd.xlane.f32.xlu1 %v492_v26 }
 0x43a   :  { %2082 = vrot.lane.b32.xlu1 %v2330_v41, %s2214_s1  ;;  %s2602_s1 = sld [smem:[#allocation2 + $0x1]] }
 0x43b   :  { %2077 = vrot.lane.b32.xlu0 %v2330_v41, %s2215_s10 }
 0x43e   :  { %2087 = vrot.lane.b32.xlu1 %v2330_v41, %s2216_s11 }
 0x43f   :  { %588 = vrot.lane.b32.xlu0 %v2322_v38, %s2217_s12 }
 0x440   :  { %p1630_p6 = scmp.ne.s32.totalorder %s2602_s1, 4294967295 }
 0x442   :  { %586 = vrot.lane.b32.xlu1 %v2324_v40, %s2217_s12  ;;  %s2612_s12 = scalar_select %p1515_p5, 1.0, 0.0 }
 0x4a9   :  { %v290_v30 = vpop.xlane.xlu1 %289 }
 0x4aa   :  { %v287_v28 = vpop.xlane.xlu0 %286 }
 0x4ab   :  { %2128 = vrcp.f32 %v287_v28 }
 0x4ac   :  { %2130 = vrcp.f32 %v290_v30 }
 0x4b2   :  { %v491_v31 = vpop.xlane.xlu0 %490 }
 0x4b3   :  { %2132 = vrcp.f32 %v491_v31 }
 0x4b5   :  { %v2129_v33 = vpop.eup %2128 }
 0x4b6   :  { %v494_v34 = vpop.xlane.xlu1 %493  ;;  %v2078_v36 = vpop.permute.xlu0 %2077  ;;  %v293_v37 = vmul.f32 %v2129_v33, %v2123_v19 }
 0x4b7   :  { %2134 = vrcp.f32 %v494_v34  ;;  %v2080_v39 = vunpack.i.h.bf16 %v2078_v36  ;;  %v2079_v42 = vunpack.i.l.bf16 %v2078_v36  ;;  %v2131_v44 = vpop.eup %2130 }
 0x4b8   :  { %1847 = vmatprep.mubr.msk.f32.mxu0 %vm272_vm3, %v293_v37  ;;  %v294_v51 = vmul.f32 %v2131_v44, %v2121_v18 }
 0x4b9   :  { %v1947_v43 = vpack.c.bf16 %v2080_v39, %v2079_v42 }
 0x4ba   :  { %v2083_v45 = vpop.permute.xlu1 %2082  ;;  %v589_v62 = vpop.permute.xlu0 %588 }
 0x4bb   :  { %v2085_v46 = vunpack.i.h.bf16 %v2083_v45  ;;  %v2084_v47 = vunpack.i.l.bf16 %v2083_v45  ;;  %1948 = vmatprep.subr.bf16.mxu0 %v1947_v43 }
 0x4bc   :  { %1950 = vmatpush3.bf16.msra.mxu0 %v1947_v43 }
 0x4bd   :  { %v2133_v49 = vpop.eup %2132  ;;  %v1957_v50 = vpack.c.bf16 %v2085_v46, %v2084_v47 }
 0x4be   :  { %v2088_v52 = vpop.permute.xlu1 %2087  ;;  %v497_v53 = vmul.f32 %v2133_v49, %v2125_v23 }
 0x4bf   :  { %v2090_v55 = vunpack.i.h.bf16 %v2088_v52  ;;  %v2089_v56 = vunpack.i.l.bf16 %v2088_v52  ;;  %1848 = vmatmul.mubr.msk.f32.vlgmr.msra.gmra.mrb[0].mxu0 %vm272_vm3, %v294_v51  ;;  %1958 = vmatprep.subr.bf16.mxu0 %v1957_v50 }
 0x4c0   :  { %1960 = vmatpush3.bf16.msra.mxu0 %v1957_v50  ;;  %1861 = vmatprep.mubr.msk.f32.mxu0 %vm272_vm3, %v497_v53 }
 0x4c1   :  { %v2135_v58 = vpop.eup %2134  ;;  %v1961_v59 = vpack.c.bf16 %v2090_v55, %v2089_v56 }
 0x4c2   :  { %v498_v60 = vmul.f32 %v2135_v58, %v2127_v25  ;;  %v587_v61 = vpop.permute.xlu1 %586 }
 0x4c3   :  { %1963 = vmatprep.subr.msk.bf16.mxu0 %vm2339_vm2, %v1961_v59 }
 0x4c4   :  { %1862 = vmatmul.mubr.msk.f32.vlgmr.msra.gmra.mrb[2].mxu0 %vm272_vm3, %v498_v60 }
 0x4c5   :  { %1868 = vmatprep.mubr.msk.f32.mxu0 %vm184_vm1, %v587_v61 }
 0x4c9   :  { %1966 = vmatpush3.bf16.xpose.msk.msra.mxu0 %vm2339_vm2, %v1961_v59 }
 0x4d0   :  { %1869 = vmatmul.mubr.msk.f32.vlgmr.msra.gmra.mrb[4].mxu0 %vm184_vm1, %v589_v62 }
 0x592   :  { %v2393_v63 = vpop.f32.mrb[0].mxu0 }
 0x593   :  { %v2395_v0 = vpop.f32.mrb[1].mxu0 }
 0x597   :  { %v2397_v1 = vpop.f32.mrb[2].mxu0 }
 0x598   :  { %v2399_v2 = vpop.f32.mrb[3].mxu0 }
 0x5a3   :  { %v1870_v3 = vpop.f32.mrb[4].mxu0 }
 0x5a4   :  { %v678_v4 = vmul.f32 0.35355338, %v1870_v3  ;;  %v668_v5 = vpop.f32.mrb[5].mxu0 }
 0x5a5   :  { %v677_v6 = vmul.f32 0.35355338, %v668_v5 }
 0x5a6   :  { %v680_v7 = vadd.f32 %v678_v4, %v2358_v54 }
 0x5a7   :  { %v679_v8 = vadd.f32 %v677_v6, %v2363_v57 }
 0x5a8   :  { %v684_v9 = vsel %vm272_vm3, %v680_v7, -inf }
 0x5a9   :  { %685 = vmax.xlane.f32.xlu0 %v684_v9  ;;  %v681_v10 = vsel %vm272_vm3, %v679_v8, -inf }
 0x5aa   :  { %682 = vmax.xlane.f32.xlu1 %v681_v10  ;;  %v1025_v10 = vld [vmem:[%s2686_s4] sm:$0xff] }
 0x5bb   :  { %2092 = vrot.lane.b32.xlu1 %v2330_v41, %s2218_s6 }
 0x5bf   :  { %790 = vrot.lane.b32.xlu1 %v2324_v40, %s2219_s0 }
 0x5c3   :  { %792 = vrot.lane.b32.xlu1 %v2322_v38, %s2219_s0 }
 0x636   :  { %v686_v11 = vpop.xlane.xlu0 %685 }
 0x637   :  { %v688_v12 = vsub.f32 %v680_v7, %v686_v11  ;;  %v683_v13 = vpop.xlane.xlu1 %682  ;;  %v1027_v11 = vld [vmem:[%s2686_s4 + $0x10] sm:$0xff] }
 0x638   :  { %v687_v14 = vsub.f32 %v679_v8, %v683_v13  ;;  %v1028_v13 = vld [vmem:[%s2686_s4 + $0x18] sm:$0xff] }
 0x639   :  { %v691_v15 = vmul.f32 1.442695, %v688_v12 }
 0x63a   :  { %v689_v16 = vmul.f32 1.442695, %v687_v14  ;;  %v1985_v14 = vpack.c.bf16 %v1028_v13, %v1027_v11 }
 0x63b   :  { %2136 = vpow2.f32 %v691_v15  ;;  %v2093_v17 = vpop.permute.xlu1 %2092 }
 0x63c   :  { %v2095_v18 = vunpack.i.h.bf16 %v2093_v17  ;;  %v2094_v19 = vunpack.i.l.bf16 %v2093_v17  ;;  %2138 = vpow2.f32 %v689_v16 }
 0x63e   :  { %v1967_v20 = vpack.c.bf16 %v2095_v18, %v2094_v19 }
 0x63f   :  { %v791_v37 = vpop.permute.xlu1 %790 }
 0x640   :  { %1968 = vmatprep.subr.bf16.mxu1 %v1967_v20 }
 0x641   :  { %1970 = vmatpush3.bf16.msra.mxu1 %v1967_v20 }
 0x643   :  { %v793_v39 = vpop.permute.xlu1 %792 }
 0x645   :  { %v2137_v21 = vpop.eup %2136 }
 0x646   :  { %v696_v22 = vsel %vm272_vm3, %v2137_v21, 0.0  ;;  %v2139_v40 = vpop.eup %2138 }
 0x647   :  { %697 = vadd.xlane.f32.xlu0 %v696_v22  ;;  %v693_v38 = vsel %vm272_vm3, %v2139_v40, 0.0 }
 0x64b   :  { %694 = vadd.xlane.f32.xlu0 %v693_v38 }
 0x661   :  { %2097 = vrot.lane.b32.xlu0 %v2330_v41, %s2220_s13 }
 0x6d4   :  { %v698_v23 = vpop.xlane.xlu0 %697 }
 0x6d5   :  { %2140 = vrcp.f32 %v698_v23 }
 0x6d8   :  { %v695_v24 = vpop.xlane.xlu0 %694 }
 0x6d9   :  { %2142 = vrcp.f32 %v695_v24 }
 0x6dc   :  { %v2098_v25 = vpop.permute.xlu0 %2097 }
 0x6dd   :  { %v2100_v26 = vunpack.i.h.bf16 %v2098_v25  ;;  %v2099_v28 = vunpack.i.l.bf16 %v2098_v25 }
 0x6df   :  { %v1971_v30 = vpack.c.bf16 %v2100_v26, %v2099_v28  ;;  %v2141_v31 = vpop.eup %2140 }
 0x6e0   :  { %v702_v36 = vmul.f32 %v2141_v31, %v2137_v21 }
 0x6e1   :  { %1973 = vmatprep.subr.msk.bf16.mxu1 %vm2339_vm2, %v1971_v30 }
 0x6e3   :  { %v2143_v33 = vpop.eup %2142 }
 0x6e4   :  { %v701_v34 = vmul.f32 %v2143_v33, %v2139_v40 }
 0x6e6   :  { %1875 = vmatprep.mubr.msk.f32.mxu1 %vm272_vm3, %v701_v34 }
 0x6e7   :  { %1876 = vmatmul.mubr.msk.f32.vlgmr.msra.gmra.mrb[6].mxu1 %vm272_vm3, %v702_v36 }
 0x6e8   :  { %1976 = vmatpush3.bf16.xpose.msk.msra.mxu1 %vm2339_vm2, %v1971_v30  ;;  %1882 = vmatprep.mubr.msk.f32.mxu1 %vm184_vm1, %v791_v37 }
 0x6ef   :  { %1883 = vmatmul.mubr.msk.f32.vlgmr.msra.gmra.mrb[8].mxu1 %vm184_vm1, %v793_v39  ;;  %v2111_v39 = vpack.i.bf16 %v1028_v13, %v1027_v11  ;;  %v1276_v13 = vld [vmem:[%s2687_s5 + $0x8] sm:$0xff] }
 0x7ba   :  { %v1877_v42 = vpop.f32.mrb[6].mxu1 }
 0x7bb   :  { %v781_v43 = vpop.f32.mrb[7].mxu1 }
 0x7c2   :  { %v1884_v44 = vpop.f32.mrb[8].mxu1 }
 0x7c3   :  { %v882_v45 = vmul.f32 0.35355338, %v1884_v44  ;;  %v872_v46 = vpop.f32.mrb[9].mxu1 }
 0x7c4   :  { %v881_v47 = vmul.f32 0.35355338, %v872_v46 }
 0x7c5   :  { %v884_v49 = vadd.f32 %v882_v45, %v2358_v54 }
 0x7c6   :  { %v883_v50 = vadd.f32 %v881_v47, %v2363_v57 }
 0x7c7   :  { %v888_v51 = vsel %vm272_vm3, %v884_v49, -inf }
 0x7c8   :  { %889 = vmax.xlane.f32.xlu0 %v888_v51  ;;  %v885_v48 = vsel %vm272_vm3, %v883_v50, -inf }
 0x7c9   :  { %886 = vmax.xlane.f32.xlu1 %v885_v48 }
 0x7da   :  { %2102 = vrot.lane.b32.xlu1 %v2330_v41, %s2221_s14  ;;  %s2618_s14 = scalar_select %p1630_p6, 1.0, 0.0 }
 0x7de   :  { %998 = vrot.lane.b32.xlu1 %v2397_v1, %s2222_s15 }
 0x7e2   :  { %1004 = vrot.lane.b32.xlu1 %v781_v43, %s2223_s16 }
 0x7e6   :  { %1006 = vrot.lane.b32.xlu1 %v1877_v42, %s2223_s16 }
 0x855   :  { %v890_v52 = vpop.xlane.xlu0 %889 }
 0x856   :  { %v892_v53 = vsub.f32 %v884_v49, %v890_v52  ;;  %v887_v54 = vpop.xlane.xlu1 %886 }
 0x857   :  { %v891_v55 = vsub.f32 %v883_v50, %v887_v54 }
 0x858   :  { %v895_v57 = vmul.f32 1.442695, %v892_v53 }
 0x859   :  { %v893_v56 = vmul.f32 1.442695, %v891_v55 }
 0x85a   :  { %v2103_v58 = vpop.permute.xlu1 %2102 }
 0x85b   :  { %2144 = vpow2.f32 %v893_v56  ;;  %v2105_v59 = vunpack.i.h.bf16 %v2103_v58  ;;  %v2104_v60 = vunpack.i.l.bf16 %v2103_v58 }
 0x85c   :  { %2146 = vpow2.f32 %v895_v57 }
 0x85d   :  { %v1977_v61 = vpack.c.bf16 %v2105_v59, %v2104_v60 }
 0x85e   :  { %v999_v17 = vpop.permute.xlu1 %998 }
 0x85f   :  { %1978 = vmatprep.subr.bf16.mxu0 %v1977_v61  ;;  %v1019_v40 = vsel %vm184_vm1, %v2393_v63, %v999_v17 }
 0x860   :  { %1980 = vmatpush3.bf16.msra.mxu0 %v1977_v61 }
 0x862   :  { %v1005_v18 = vpop.permute.xlu1 %1004 }
 0x865   :  { %v2145_v41 = vpop.eup %2144 }
 0x866   :  { %v897_v62 = vsel %vm272_vm3, %v2145_v41, 0.0  ;;  %v2147_v1 = vpop.eup %2146  ;;  %v1007_v20 = vpop.permute.xlu1 %1006 }
 0x867   :  { %898 = vadd.xlane.f32.xlu0 %v897_v62  ;;  %v900_v3 = vsel %vm272_vm3, %v2147_v1, 0.0  ;;  %v1021_v24 = vsel %vm272_vm3, %v1019_v40, %v1007_v20 }
 0x86b   :  { %901 = vadd.xlane.f32.xlu0 %v900_v3 }
 0x881   :  { %996 = vrot.lane.b32.xlu0 %v2399_v2, %s2222_s15  ;;  %v1026_v2 = vld [vmem:[%s2686_s4 + $0x8] sm:$0xff] }
 0x882   :  { %v1981_v12 = vpack.c.bf16 %v1026_v2, %v1025_v10  ;;  %v2106_v51 = vpack.i.bf16 %v1026_v2, %v1025_v10 }
 0x884   :  { %1982 = vmatprep.subr.bf16.mxu0 %v1981_v12 }
 0x8f4   :  { %v899_v4 = vpop.xlane.xlu0 %898 }
 0x8f5   :  { %2148 = vrcp.f32 %v899_v4 }
 0x8f8   :  { %v902_v5 = vpop.xlane.xlu0 %901 }
 0x8f9   :  { %2150 = vrcp.f32 %v902_v5 }
 0x8fc   :  { %v997_v19 = vpop.permute.xlu0 %996 }
 0x8fd   :  { %v1018_v21 = vsel %vm184_vm1, %v2395_v0, %v997_v19  ;;  %v2453_v0 = vld [vmem:[%s2684_s2 + $0x3] ss:$0 sm:$0xff]  ;;  %v1280_v19 = vld [vmem:[%s2687_s5 + $0x28] sm:$0xff] }
 0x8fe   :  { %v1020_v38 = vsel %vm272_vm3, %v1018_v21, %v1005_v18  ;;  %v1279_v18 = vld [vmem:[%s2687_s5 + $0x20] sm:$0xff]  ;;  %v1281_v21 = vld [vmem:[%s2687_s5 + $0x30] sm:$0xff] }
 0x8ff   :  { %v2149_v6 = vpop.eup %2148  ;;  %v2005_v20 = vpack.c.bf16 %v1280_v19, %v1279_v18 }
 0x900   :  { %v905_v7 = vmul.f32 %v2149_v6, %v2145_v41 }
 0x902   :  { %1889 = vmatprep.mubr.msk.f32.mxu0 %vm272_vm3, %v905_v7 }
 0x903   :  { %v2151_v8 = vpop.eup %2150 }
 0x904   :  { %v906_v9 = vmul.f32 %v2151_v8, %v2147_v1 }
 0x906   :  { %1890 = vmatmul.mubr.msk.f32.vlgmr.msra.gmra.mrb[6].mxu0 %vm272_vm3, %v906_v9 }
 0x907   :  { %1984 = vmatpush3.bf16.msra.mxu0 %v1981_v12  ;;  %v1275_v12 = vld [vmem:[%s2687_s5] sm:$0xff] }
 0x908   :  { %1986 = vmatprep.subr.bf16.mxu0 %v1985_v14 }
 0x90b   :  { %1988 = vmatpush3.bf16.msra.mxu0 %v1985_v14  ;;  %v1997_v14 = vpack.c.bf16 %v1276_v13, %v1275_v12 }
 0x90d   :  { %1998 = vmatprep.subr.bf16.mxu0 %v1997_v14 }
 0x9d9   :  { %v1891_v15 = vpop.f32.mrb[6].mxu0 }
 0x9da   :  { %1014 = vrot.lane.b32.xlu1 %v1891_v15, %s2224_s24  ;;  %v985_v16 = vpop.f32.mrb[7].mxu0  ;;  %v1277_v15 = vld [vmem:[%s2687_s5 + $0x10] sm:$0xff] }
 0x9db   :  { %1012 = vrot.lane.b32.xlu0 %v985_v16, %s2224_s24  ;;  %v1278_v16 = vld [vmem:[%s2687_s5 + $0x18] sm:$0xff] }
 0x9dc   :  { %v2001_v17 = vpack.c.bf16 %v1278_v16, %v1277_v15 }
 0xa4c   :  { %v1015_v22 = vpop.permute.xlu1 %1014 }
 0xa4d   :  { %v1013_v23 = vpop.permute.xlu0 %1012  ;;  %v1024_v26 = vsel %vm1022_vm4, %v1021_v24, %v1015_v22  ;;  %v1282_v22 = vld [vmem:[%s2687_s5 + $0x38] sm:$0xff] }
 0xa4e   :  { %v1023_v25 = vsel %vm1022_vm4, %v1020_v38, %v1013_v23  ;;  %v2009_v40 = vpack.c.bf16 %v1282_v22, %v1281_v21  ;;  %v1755_v38 = vld [vmem:[%s2684_s2 + $0x4] ss:$0 sm:$0xff] }
 0xa4f   :  { %1900 = vmatprep.mubr.msk.f32.mxu0 %vm46_vm0, %v1023_v25 }
 0xa50   :  { %1901 = vmatmul.mubr.msk.f32.vlgmr.msra.gmra.mrb[8].mxu0 %vm46_vm0, %v1024_v26 }
 0xa51   :  { %2000 = vmatpush3.bf16.msra.mxu0 %v1997_v14 }
 0xa52   :  { %2002 = vmatprep.subr.bf16.mxu0 %v2001_v17 }
 0xa55   :  { %2004 = vmatpush3.bf16.msra.mxu0 %v2001_v17 }
 0xa56   :  { %2006 = vmatprep.subr.bf16.mxu0 %v2005_v20 }
 0xa59   :  { %2008 = vmatpush3.bf16.msra.mxu0 %v2005_v20 }
 0xa5a   :  { %2010 = vmatprep.subr.bf16.mxu0 %v2009_v40 }
 0xa5d   :  { %2012 = vmatpush3.bf16.msra.mxu0 %v2009_v40 }
 0xb23   :  { %v1902_v28 = vpop.f32.mrb[8].mxu0 }
 0xb24   :  { %v1112_v30 = vadd.f32 %v1902_v28, %v2453_v0  ;;  %v1106_v63 = vpop.f32.mrb[9].mxu0 }
 0xb25   :  { %v1107_v31 = vadd.f32 %v2453_v0, %v1106_v63 }
 0xb26   :  { %v1116_v33 = vadd.f32 %v1112_v30, %v2315_v35 }
 0xb27   :  { %v1115_v34 = vadd.f32 %v1107_v31, %v2309_v32 }
 0xb28   :  { %v1120_v36 = vsel %vm46_vm0, %v1116_v33, 0.0 }
 0xb29   :  { %1121 = vadd.xlane.f32.xlu1 %v1120_v36  ;;  %v1117_v37 = vsel %vm46_vm0, %v1115_v34, 0.0 }
 0xb2a   :  { %1118 = vadd.xlane.f32.xlu0 %v1117_v37 }
 0xb3a   :  { %2112 = vrot.lane.b32.xlu1 %v2111_v39, %s2212_s26 }
 0xb3e   :  { %1144 = vrot.lane.b32.xlu1 %v2300_v27, %s2212_s26 }
 0xb42   :  { %1150 = vrot.lane.b32.xlu1 %v2305_v29, %s2212_s26 }
 0xbb6   :  { %v1122_v42 = vpop.xlane.xlu1 %1121 }
 0xbb7   :  { %v1124_v43 = vmul.f32 0.03125, %v1122_v42  ;;  %v1119_v35 = vpop.xlane.xlu0 %1118 }
 0xbb8   :  { %v1123_v44 = vmul.f32 0.03125, %v1119_v35 }
 0xbb9   :  { %v1126_v32 = vsub.f32 %v1116_v33, %v1124_v43 }
 0xbba   :  { %v1125_v45 = vsub.f32 %v1115_v34, %v1123_v44  ;;  %v2113_v57 = vpop.permute.xlu1 %2112 }
 0xbbb   :  { %v1128_v46 = vmul.f32 %v1126_v32, %v1126_v32  ;;  %v2115_v58 = vunpack.i.h.bf16 %v2113_v57  ;;  %v2114_v59 = vunpack.i.l.bf16 %v2113_v57 }
 0xbbc   :  { %v1127_v49 = vmul.f32 %v1125_v45, %v1125_v45 }
 0xbbd   :  { %v1132_v47 = vsel %vm46_vm0, %v1128_v46, 0.0  ;;  %v1993_v1 = vpack.c.bf16 %v2115_v58, %v2114_v59 }
 0xbbe   :  { %1133 = vadd.xlane.f32.xlu0 %v1132_v47  ;;  %v1129_v50 = vsel %vm46_vm0, %v1127_v49, 0.0  ;;  %v1145_v4 = vpop.permute.xlu1 %1144 }
 0xbc2   :  { %1130 = vadd.xlane.f32.xlu0 %v1129_v50  ;;  %v1151_v10 = vpop.permute.xlu1 %1150 }
 0xbd8   :  { %2107 = vrot.lane.b32.xlu0 %v2106_v51, %s2212_s26 }
 0xbdc   :  { %1284 = vrot.lane.b32.xlu0 %v2453_v0, %s2212_s26  ;;  %s2225_s26 = smov 63  }
 0xc4b   :  { %v1134_v48 = vpop.xlane.xlu0 %1133 }
 0xc4c   :  { %v1136_v52 = vmul.f32 0.03125, %v1134_v48 }
 0xc4e   :  { %v1138_v53 = vadd.f32 1e-05, %v1136_v52 }
 0xc4f   :  { %v1131_v54 = vpop.xlane.xlu0 %1130 }
 0xc50   :  { %2152 = vrsqrt.f32 %v1138_v53  ;;  %v1135_v55 = vmul.f32 0.03125, %v1131_v54 }
 0xc52   :  { %v1137_v56 = vadd.f32 1e-05, %v1135_v55 }
 0xc53   :  { %v2108_v60 = vpop.permute.xlu0 %2107 }
 0xc54   :  { %2154 = vrsqrt.f32 %v1137_v56  ;;  %v2110_v61 = vunpack.i.h.bf16 %v2108_v60  ;;  %v2109_v41 = vunpack.i.l.bf16 %v2108_v60 }
 0xc56   :  { %v1989_v62 = vpack.c.bf16 %v2110_v61, %v2109_v41 }
 0xc57   :  { %v2503_v50 = vpop.permute.xlu0 %1284 }
 0xc58   :  { %1990 = vmatprep.subr.bf16.mxu1 %v1989_v62 }
 0xc59   :  { %1992 = vmatpush3.bf16.msra.mxu1 %v1989_v62 }
 0xc5a   :  { %v2153_v3 = vpop.eup %2152  ;;  %1994 = vmatprep.subr.bf16.mxu1 %v1993_v1 }
 0xc5b   :  { %v1142_v5 = vmul.f32 %v2153_v3, %v1126_v32 }
 0xc5d   :  { %1996 = vmatpush3.bf16.msra.mxu1 %v1993_v1  ;;  %v1148_v8 = vmul.f32 %v1145_v4, %v1142_v5  ;;  %v2522_v5 = vld [vmem:[%s2684_s2 + $0x5] ss:$0 sm:$0xff] }
 0xc5e   :  { %v2155_v6 = vpop.eup %2154 }
 0xc5f   :  { %v1141_v7 = vmul.f32 %v2155_v6, %v1125_v45  ;;  %v2471_v11 = vadd.f32 %v1151_v10, %v1148_v8 }
 0xc61   :  { %v1147_v9 = vmul.f32 %v1145_v4, %v1141_v7 }
 0xc63   :  { %v1153_v2 = vadd.f32 %v1151_v10, %v1147_v9 }
 0xc65   :  { %1911 = vmatprep.mubr.msk.f32.mxu1 %vm46_vm0, %v1153_v2 }
 0xc66   :  { %1912 = vmatmul.mubr.msk.f32.vlgmr.msra.gmra.mrb[10].mxu1 %vm46_vm0, %v2471_v11 }
 0xd39   :  { %v1913_v23 = vpop.f32.mrb[10].mxu1 }
 0xd3a   :  { %v1254_v24 = vadd.f32 %v1913_v23, %v1755_v38  ;;  %v1248_v25 = vpop.f32.mrb[11].mxu1 }
 0xd3b   :  { %v1249_v26 = vadd.f32 %v1755_v38, %v1248_v25  ;;  %v1461_v25 = vlaneseq }
 0xd3c   :  { %v1258_v28 = vmul.f32 %v1254_v24, %v1254_v24 }
 0xd3d   :  { %v1257_v30 = vmul.f32 %v1249_v26, %v1249_v26 }
 0xd3e   :  { %v1260_v63 = vmul.f32 %v1258_v28, %v1254_v24  ;;  %v1498_v28 = vstv %s2545_s22 }
 0xd3f   :  { %v1259_v31 = vmul.f32 %v1257_v30, %v1249_v26 }
 0xd40   :  { %v1262_v33 = vmul.f32 0.044715, %v1260_v63 }
 0xd41   :  { %v1261_v34 = vmul.f32 0.044715, %v1259_v31 }
 0xd42   :  { %v1264_v36 = vadd.f32 %v1262_v33, %v1254_v24 }
 0xd43   :  { %v1263_v37 = vadd.f32 %v1261_v34, %v1249_v26 }
 0xd44   :  { %v1266_v39 = vmul.f32 0.7978846, %v1264_v36 }
 0xd45   :  { %v1265_v42 = vmul.f32 0.7978846, %v1263_v37 }
 0xd46   :  { %2156 = vtanh.f32 %v1266_v39 }
 0xd47   :  { %2158 = vtanh.f32 %v1265_v42 }
 0xd50   :  { %v2157_v43 = vpop.eup %2156 }
 0xd51   :  { %v2159_v35 = vpop.eup %2158  ;;  %v1270_v44 = vadd.f32 1.0, %v2157_v43 }
 0xd52   :  { %v1269_v32 = vadd.f32 1.0, %v2159_v35 }
 0xd53   :  { %v1272_v45 = vmul.f32 0.5, %v1270_v44 }
 0xd54   :  { %v1271_v46 = vmul.f32 0.5, %v1269_v32 }
 0xd55   :  { %v1274_v49 = vmul.f32 %v1272_v45, %v1254_v24 }
 0xd56   :  { %v1273_v47 = vmul.f32 %v1271_v46, %v1249_v26  ;;  %v2547_v26 = vshrl.u32 %v1461_v25, 7 }
 0xd58   :  { %1930 = vmatprep.mubr.msk.f32.mxu0 %vm1287_vm5, %v1273_v47  ;;  %vm1499_vm8 = vcmp.eq.s32.totalorder %v2547_v26, %v1498_v28 }
 0xd59   :  { %1931 = vmatmul.mubr.msk.f32.vlgmr.msra.gmra.mrb[10].mxu0 %vm1287_vm5, %v1274_v49 }
 0xe2c   :  { %v2505_v51 = vpop.f32.mrb[10].mxu0 }
 0xe2d   :  { %v1360_v48 = vpop.f32.mrb[11].mxu0  ;;  %v1366_v36 = vadd.f32 %v2505_v51, %v2503_v50 }
 0xe2e   :  { %v1361_v52 = vadd.f32 %v1360_v48, %v2503_v50 }
 0xe2f   :  { %v1370_v44 = vadd.f32 %v1366_v36, %v2471_v11 }
 0xe30   :  { %v1369_v53 = vadd.f32 %v1361_v52, %v1153_v2 }
 0xe31   :  { %v1374_v45 = vsel %vm46_vm0, %v1370_v44, 0.0 }
 0xe32   :  { %v1371_v54 = vsel %vm46_vm0, %v1369_v53, 0.0 }
 0xe33   :  { %1372 = vadd.xlane.f32.xlu1 %v1371_v54 }
 0xe44   :  { %1402 = vrot.lane.b32.xlu1 %v2305_v29, %s2215_s10 }
 0xec0   :  { %v1373_v55 = vpop.xlane.xlu1 %1372 }
 0xec1   :  { %v1377_v57 = vmul.f32 0.03125, %v1373_v55 }
 0xec3   :  { %v1379_v56 = vsub.f32 %v1369_v53, %v1377_v57 }
 0xec4   :  { %v2516_v4 = vpop.permute.xlu1 %1402 }
 0xec5   :  { %v1381_v58 = vmul.f32 %v1379_v56, %v1379_v56 }
 0xec7   :  { %v1383_v59 = vsel %vm46_vm0, %v1381_v58, 0.0 }
 0xec8   :  { %1384 = vadd.xlane.f32.xlu0 %v1383_v59 }
 0xede   :  { %1397 = vrot.lane.b32.xlu0 %v2300_v27, %s2215_s10  ;;  %v2528_v27 = vld [vmem:[%s2684_s2 + $0x6] ss:$0 sm:$0xff] }
 0xf55   :  { %v1385_v60 = vpop.xlane.xlu0 %1384 }
 0xf56   :  { %v1389_v61 = vmul.f32 0.03125, %v1385_v60 }
 0xf58   :  { %v1391_v41 = vadd.f32 1e-05, %v1389_v61 }
 0xf59   :  { %v2514_v1 = vpop.permute.xlu0 %1397 }
 0xf5a   :  { %2160 = vrsqrt.f32 %v1391_v41 }
 0xf64   :  { %v2161_v62 = vpop.eup %2160 }
 0xf65   :  { %v1395_v3 = vmul.f32 %v2161_v62, %v1379_v56 }
 0xf67   :  { %v1400_v29 = vmul.f32 %v2514_v1, %v1395_v3 }
 0xf69   :  { %v1405_v6 = vadd.f32 %v2516_v4, %v1400_v29 }
 0xf6b   :  { %v1413_v7 = vmul.f32 %v2522_v5, %v1405_v6  ;;  %v1427_v9 = vmul.f32 %v2528_v27, %v1405_v6 }
 0xf6d   :  { %v1415_v8 = vsel %vm46_vm0, %v1413_v7, 0.0  ;;  %v1429_v10 = vsel %vm46_vm0, %v1427_v9, 0.0 }
 0xf6e   :  { %1416 = vadd.xlane.f32.xlu1 %v1415_v8 }
 0xf72   :  { %1430 = vadd.xlane.f32.xlu1 %v1429_v10 }
 0xffb   :  { %v1417_v2 = vpop.xlane.xlu1 %1416 }
 0xffc   :  { %v2535_v12 = vadd.f32 %v2453_v0, %v1417_v2 }
 0xffe   :  { %v1465_v13 = vsel %vm1464_vm6, %v2535_v12, -inf  ;;  %v1500_v30 = vsel %vm1499_vm8, %v2535_v12, 0.0 }
 0xfff   :  { %1466 = vmax.xlane.f32.xlu0 %v1465_v13  ;;  %v1431_v63 = vpop.xlane.xlu1 %1430 }
0x1000   :  { %v2554_v31 = vadd.f32 %v2453_v0, %v1431_v63 }
0x1002   :  { %v1521_v33 = vsel %vm1520_vm9, %v2554_v31, -inf }
0x108c   :  { %v1467_v14 = vpop.xlane.xlu0 %1466 }
0x108d   :  { %v1468_v15 = vrot.slane %v1467_v14, 4 }
0x108f   :  { %v1469_v16 = vmax.f32 %v1467_v14, %v1468_v15 }
0x1091   :  { %v1470_v17 = vrot.slane %v1469_v16, 2 }
0x1093   :  { %v1471_v18 = vmax.f32 %v1469_v16, %v1470_v17 }
0x1095   :  { %v1472_v19 = vrot.slane %v1471_v18, 1 }
0x1097   :  { %v1473_v20 = vmax.f32 %v1471_v18, %v1472_v19 }
0x1099   :  { %2013 = vpush %v1473_v20 }
0x10ca   :  { %s2539_s2 = spop %2013 }
0x10cb   :  { %v1475_v21 = vstv %s2539_s2 }
0x10cc   :  { %v1476_v22 = vsub.f32 %v2535_v12, %v1475_v21 }
0x10ce   :  { %v1477_v40 = vmul.f32 1.442695, %v1476_v22 }
0x10d0   :  { %2162 = vpow2.f32 %v1477_v40 }
0x10da   :  { %v2163_v38 = vpop.eup %2162 }
0x10db   :  { %1480 = vrot.lane.b32.xlu0 %v2163_v38, %s2215_s10 }
0x114d   :  { %v1481_v23 = vpop.permute.xlu0 %1480 }
0x114e   :  { %v1483_v24 = vsel %vm1453_vm7, %v1481_v23, 0.0  ;;  %v1554_v23 = vstv %s2578_s27 }
0x114f   :  { %1484 = vadd.xlane.f32.xlu1 %v1483_v24  ;;  %vm1555_vm10 = vcmp.eq.s32.totalorder %v2547_v26, %v1554_v23 }
0x1150   :  { %v1556_v24 = vsel %vm1555_vm10, %v2554_v31, 0.0 }
0x1160   :  { %1502 = vrot.lane.b32.xlu1 %v1500_v30, %s2215_s10 }
0x1184   :  { %1522 = vmax.xlane.f32.xlu1 %v1521_v33 }
0x11dc   :  { %v1485_v34 = vpop.xlane.xlu1 %1484 }
0x11dd   :  { %v1486_v37 = vrot.slane %v1485_v34, 4 }
0x11df   :  { %v1487_v39 = vadd.f32 %v1486_v37, %v1485_v34 }
0x11e0   :  { %v1503_v42 = vpop.permute.xlu1 %1502 }
0x11e1   :  { %v1488_v43 = vrot.slane %v1487_v39, 2  ;;  %v1505_v35 = vsel %vm1453_vm7, %v1503_v42, 0.0 }
0x11e2   :  { %1506 = vadd.xlane.f32.xlu0 %v1505_v35 }
0x11e3   :  { %v1489_v32 = vadd.f32 %v1488_v43, %v1487_v39 }
0x11e5   :  { %v1490_v46 = vrot.slane %v1489_v32, 1 }
0x11e6   :  { %1375 = vadd.xlane.f32.xlu0 %v1374_v45 }
0x11e7   :  { %v1491_v47 = vadd.f32 %v1490_v46, %v1489_v32 }
0x11e9   :  { %2015 = vpush %v1491_v47 }
0x1211   :  { %v1523_v48 = vpop.xlane.xlu1 %1522 }
0x1212   :  { %v1524_v52 = vrot.slane %v1523_v48, 4 }
0x1214   :  { %v1525_v53 = vmax.f32 %v1523_v48, %v1524_v52 }
0x1216   :  { %v1526_v54 = vrot.slane %v1525_v53, 2 }
0x1218   :  { %v1527_v58 = vmax.f32 %v1525_v53, %v1526_v54 }
0x121a   :  { %s2016_s23 = spop %2015  ;;  %v1528_v62 = vrot.slane %v1527_v58, 1 }
0x121b   :  { %v1493_v49 = vstv %s2016_s23 }
0x121c   :  { %2164 = vlog2.f32 %v1493_v49  ;;  %v1529_v8 = vmax.f32 %v1527_v58, %v1528_v62  ;;  %v1613_v62 = vstv %s2602_s1 }
0x121d   :  { %vm1614_vm11 = vcmp.eq.s32.totalorder %v2547_v26, %v1613_v62 }
0x1226   :  { %v2165_v50 = vpop.eup %2164 }
0x1227   :  { %v1495_v51 = vmul.f32 0.6931472, %v2165_v50 }
0x1229   :  { %2017 = vpush %v1495_v51 }
0x125a   :  { %s2564_s24 = spop %2017 }
0x125b   :  { %s1497_s6 = sadd.f32 %s2564_s24, %s2539_s2  ;;  %s2196_s2 = scalar_lea.hbm %s2690_s8, 16 }
0x125c   :  { %s2657_s24 = scalar_select %p1571_p8, 1.0, 0.0 }
0x125d   :  { %p2197_p9 = scmp.ne.s32.totalorder %s2690_s8, %s2196_s2  ;;  %p2200_p10 = scmp.lt.u32.totalorder %s2196_s2, %s2690_s8 }
0x125f   :  { %p2202_p11 = pnand %p2200_p10, %p2197_p9 }
0x126f   :  { %v1507_v55 = vpop.xlane.xlu0 %1506 }
0x1270   :  { %v1508_v11 = vrot.slane %v1507_v55, 4 }
0x1272   :  { %v1509_v57 = vadd.f32 %v1508_v11, %v1507_v55 }
0x1273   :  { %v1376_v56 = vpop.xlane.xlu0 %1375 }
0x1274   :  { %v1510_v59 = vrot.slane %v1509_v57, 2  ;;  %v1378_v60 = vmul.f32 0.03125, %v1376_v56 }
0x1276   :  { %v1380_v61 = vsub.f32 %v1370_v44, %v1378_v60  ;;  %v1511_v41 = vadd.f32 %v1510_v59, %v1509_v57 }
0x1278   :  { %v1382_v3 = vmul.f32 %v1380_v61, %v1380_v61  ;;  %v1512_v29 = vrot.slane %v1511_v41, 1 }
0x127a   :  { %v1386_v6 = vsel %vm46_vm0, %v1382_v3, 0.0  ;;  %v1513_v7 = vadd.f32 %v1512_v29, %v1511_v41 }
0x127b   :  { %1387 = vadd.xlane.f32.xlu0 %v1386_v6 }
0x127c   :  { %2019 = vpush %v1513_v7 }
0x127d   :  { %2021 = vpush %v1529_v8 }
0x12ad   :  { %s2566_s4 = spop %2019 }
0x12ae   :  { %s2568_s25 = spop %2021  ;;  %s1517_s13 = ssub.f32 %s1497_s6, %s2566_s4 }
0x12af   :  { %v1531_v9 = vstv %s2568_s25  ;;  %s1690_s4 = sadd.f32 %s2618_s14, %s2612_s12 }
0x12b0   :  { %v1532_v10 = vsub.f32 %v2554_v31, %v1531_v9  ;;  %s1518_s19 = smul.f32 %s1517_s13, %s2612_s12 }
0x12b2   :  { %v1533_v2 = vmul.f32 1.442695, %v1532_v10 }
0x12b4   :  { %2166 = vpow2.f32 %v1533_v2 }
0x12be   :  { %v2167_v13 = vpop.eup %2166 }
0x12bf   :  { %1536 = vrot.lane.b32.xlu0 %v2167_v13, %s2225_s26 }
0x1308   :  { %v1388_v14 = vpop.xlane.xlu0 %1387 }
0x1309   :  { %v1390_v15 = vmul.f32 0.03125, %v1388_v14 }
0x130b   :  { %v1392_v16 = vadd.f32 1e-05, %v1390_v15 }
0x130d   :  { %2168 = vrsqrt.f32 %v1392_v16 }
0x1317   :  { %v2169_v17 = vpop.eup %2168 }
0x1318   :  { %v1396_v18 = vmul.f32 %v2169_v17, %v1380_v61 }
0x131a   :  { %v1401_v19 = vmul.f32 %v2514_v1, %v1396_v18 }
0x131c   :  { %v1406_v20 = vadd.f32 %v2516_v4, %v1401_v19 }
0x131e   :  { %v1414_v21 = vmul.f32 %v2522_v5, %v1406_v20  ;;  %v1428_v25 = vmul.f32 %v2528_v27, %v1406_v20 }
0x1320   :  { %v1418_v22 = vsel %vm46_vm0, %v1414_v21, 0.0  ;;  %v1432_v28 = vsel %vm46_vm0, %v1428_v25, 0.0 }
0x1321   :  { %1419 = vadd.xlane.f32.xlu1 %v1418_v22 }
0x1331   :  { %v1537_v40 = vpop.permute.xlu0 %1536 }
0x1332   :  { %v1539_v38 = vsel %vm1453_vm7, %v1537_v40, 0.0 }
0x1333   :  { %1540 = vadd.xlane.f32.xlu1 %v1539_v38 }
0x1344   :  { %1558 = vrot.lane.b32.xlu1 %v1556_v24, %s2225_s26 }
0x13ae   :  { %v1420_v1 = vpop.xlane.xlu1 %1419 }
0x13af   :  { %v2585_v4 = vadd.f32 %v2453_v0, %v1420_v1 }
0x13b1   :  { %v1580_v5 = vsel %vm1464_vm6, %v2585_v4, -inf  ;;  %v1615_v3 = vsel %vm1614_vm11, %v2585_v4, 0.0 }
0x13b2   :  { %1581 = vmax.xlane.f32.xlu1 %v1580_v5 }
0x13b6   :  { %1433 = vadd.xlane.f32.xlu1 %v1432_v28 }
0x13c0   :  { %v1541_v30 = vpop.xlane.xlu1 %1540 }
0x13c1   :  { %v1542_v63 = vrot.slane %v1541_v30, 4 }
0x13c3   :  { %v1543_v33 = vadd.f32 %v1542_v63, %v1541_v30 }
0x13c4   :  { %v1559_v34 = vpop.permute.xlu1 %1558 }
0x13c5   :  { %v1544_v36 = vrot.slane %v1543_v33, 2  ;;  %v1561_v37 = vsel %vm1453_vm7, %v1559_v34, 0.0 }
0x13c6   :  { %1562 = vadd.xlane.f32.xlu0 %v1561_v37 }
0x13c7   :  { %v1545_v39 = vadd.f32 %v1544_v36, %v1543_v33 }
0x13c9   :  { %v1546_v42 = vrot.slane %v1545_v39, 1 }
0x13cb   :  { %v1547_v43 = vadd.f32 %v1546_v42, %v1545_v39  ;;  %v1668_v39 = vstv %s2628_s21 }
0x13cc   :  { %vm1669_vm12 = vcmp.eq.s32.totalorder %v2547_v26, %v1668_v39 }
0x13cd   :  { %2023 = vpush %v1547_v43 }
0x13fe   :  { %s2024_s28 = spop %2023 }
0x13ff   :  { %v1549_v35 = vstv %s2024_s28 }
0x1400   :  { %2170 = vlog2.f32 %v1549_v35 }
0x140a   :  { %v2171_v27 = vpop.eup %2170 }
0x140b   :  { %v1551_v44 = vmul.f32 0.6931472, %v2171_v27 }
0x140d   :  { %2025 = vpush %v1551_v44 }
0x143e   :  { %s2592_s29 = spop %2025 }
0x143f   :  { %v1582_v32 = vpop.xlane.xlu1 %1581 }
0x1440   :  { %v1583_v45 = vrot.slane %v1582_v32, 4 }
0x1442   :  { %v1584_v46 = vmax.f32 %v1582_v32, %v1583_v45 }
0x1443   :  { %v1434_v29 = vpop.xlane.xlu1 %1433 }
0x1444   :  { %v1585_v47 = vrot.slane %v1584_v46, 2  ;;  %v1436_v6 = vadd.f32 %v2453_v0, %v1434_v29 }
0x1446   :  { %v1586_v48 = vmax.f32 %v1584_v46, %v1585_v47  ;;  %v1635_v7 = vsel %vm1520_vm9, %v1436_v6, -inf  ;;  %v1670_v43 = vsel %vm1669_vm12, %v1436_v6, 0.0 }
0x1448   :  { %v1587_v54 = vrot.slane %v1586_v48, 1 }
0x144a   :  { %v1588_v57 = vmax.f32 %v1586_v48, %v1587_v54 }
0x1453   :  { %v1563_v49 = vpop.xlane.xlu0 %1562 }
0x1454   :  { %v1564_v50 = vrot.slane %v1563_v49, 4 }
0x1456   :  { %v1565_v51 = vadd.f32 %v1564_v50, %v1563_v49 }
0x1458   :  { %v1566_v52 = vrot.slane %v1565_v51, 2 }
0x145a   :  { %v1567_v53 = vadd.f32 %v1566_v52, %v1565_v51 }
0x145c   :  { %v1568_v55 = vrot.slane %v1567_v53, 1 }
0x145e   :  { %v1569_v11 = vadd.f32 %v1568_v55, %v1567_v53 }
0x1460   :  { %2027 = vpush %v1569_v11 }
0x1461   :  { %2029 = vpush %v1588_v57 }
0x1491   :  { %s2594_s30 = spop %2027 }
0x1492   :  { %s2596_s9 = spop %2029 }
0x1493   :  { %v1590_v56 = vstv %s2596_s9 }
0x1494   :  { %v1591_v58 = vsub.f32 %v2585_v4, %v1590_v56 }
0x1496   :  { %v1592_v59 = vmul.f32 1.442695, %v1591_v58  ;;  %v1693_v58 = vstv %s1690_s4 }
0x1498   :  { %2172 = vpow2.f32 %v1592_v59 }
0x14a2   :  { %v2173_v60 = vpop.eup %2172 }
0x14a3   :  { %1595 = vrot.lane.b32.xlu0 %v2173_v60, %s2215_s10 }
0x1515   :  { %v1596_v61 = vpop.permute.xlu0 %1595 }
0x1516   :  { %v1598_v41 = vsel %vm1453_vm7, %v1596_v61, 0.0 }
0x1517   :  { %1599 = vadd.xlane.f32.xlu1 %v1598_v41 }
0x1528   :  { %1617 = vrot.lane.b32.xlu1 %v1615_v3, %s2215_s10 }
0x154c   :  { %1636 = vmax.xlane.f32.xlu1 %v1635_v7 }
0x15a4   :  { %v1600_v8 = vpop.xlane.xlu1 %1599 }
0x15a5   :  { %v1601_v9 = vrot.slane %v1600_v8, 4 }
0x15a7   :  { %v1602_v10 = vadd.f32 %v1601_v9, %v1600_v8 }
0x15a8   :  { %v1618_v2 = vpop.permute.xlu1 %1617 }
0x15a9   :  { %v1603_v13 = vrot.slane %v1602_v10, 2  ;;  %v1620_v14 = vsel %vm1453_vm7, %v1618_v2, 0.0 }
0x15aa   :  { %1621 = vadd.xlane.f32.xlu0 %v1620_v14 }
0x15ab   :  { %v1604_v15 = vadd.f32 %v1603_v13, %v1602_v10 }
0x15ad   :  { %v1605_v16 = vrot.slane %v1604_v15, 1 }
0x15af   :  { %v1606_v17 = vadd.f32 %v1605_v16, %v1604_v15 }
0x15b1   :  { %2031 = vpush %v1606_v17 }
0x15d9   :  { %v1637_v20 = vpop.xlane.xlu1 %1636 }
0x15da   :  { %v1638_v21 = vrot.slane %v1637_v20, 4 }
0x15dc   :  { %v1639_v22 = vmax.f32 %v1637_v20, %v1638_v21 }
0x15de   :  { %v1640_v40 = vrot.slane %v1639_v22, 2 }
0x15e0   :  { %v1641_v1 = vmax.f32 %v1639_v22, %v1640_v40 }
0x15e2   :  { %s2032_s11 = spop %2031  ;;  %v1642_v28 = vrot.slane %v1641_v1, 1 }
0x15e3   :  { %v1608_v18 = vstv %s2032_s11 }
0x15e4   :  { %2174 = vlog2.f32 %v1608_v18  ;;  %v1643_v33 = vmax.f32 %v1641_v1, %v1642_v28 }
0x15ee   :  { %v2175_v19 = vpop.eup %2174 }
0x15ef   :  { %v1610_v0 = vmul.f32 0.6931472, %v2175_v19 }
0x15f1   :  { %2033 = vpush %v1610_v0 }
0x1622   :  { %s2034_s0 = spop %2033 }
0x1623   :  { %s1612_s15 = sadd.f32 %s2034_s0, %s2596_s9 }
0x1637   :  { %v1622_v38 = vpop.xlane.xlu0 %1621 }
0x1638   :  { %v1623_v23 = vrot.slane %v1622_v38, 4 }
0x163a   :  { %v1624_v24 = vadd.f32 %v1623_v23, %v1622_v38 }
0x163c   :  { %v1625_v5 = vrot.slane %v1624_v24, 2 }
0x163e   :  { %v1626_v25 = vadd.f32 %v1625_v5, %v1624_v24 }
0x1640   :  { %v1627_v30 = vrot.slane %v1626_v25, 1 }
0x1642   :  { %v1628_v63 = vadd.f32 %v1627_v30, %v1626_v25 }
0x1644   :  { %2035 = vpush %v1628_v63 }
0x1645   :  { %2037 = vpush %v1643_v33 }
0x1675   :  { %s2036_s16 = spop %2035 }
0x1676   :  { %s1632_s17 = ssub.f32 %s1612_s15, %s2036_s16  ;;  %s2621_s18 = spop %2037 }
0x1677   :  { %v1645_v34 = vstv %s2621_s18 }
0x1678   :  { %s1633_s5 = smul.f32 %s1632_s17, %s2618_s14  ;;  %v1646_v36 = vsub.f32 %v1436_v6, %v1645_v34 }
0x167a   :  { %v1647_v37 = vmul.f32 1.442695, %v1646_v36  ;;  %s2626_s20 = sadd.f32 %s1633_s5, %s1518_s19 }
0x167c   :  { %2176 = vpow2.f32 %v1647_v37 }
0x1686   :  { %v2177_v42 = vpop.eup %2176 }
0x1687   :  { %1650 = vrot.lane.b32.xlu0 %v2177_v42, %s2225_s26 }
0x168b   :  { %1672 = vrot.lane.b32.xlu0 %v1670_v43, %s2225_s26 }
0x168f   :  { %1439 = vrot.lane.b32.xlu0 %v2535_v12, %s2215_s10 }
0x1693   :  { %1447 = vrot.lane.b32.xlu0 %v2554_v31, %s2215_s10 }
0x1697   :  { %1449 = vrot.lane.b32.xlu0 %v1436_v6, %s2215_s10 }
0x16f9   :  { %v1651_v35 = vpop.permute.xlu0 %1650 }
0x16fa   :  { %v1653_v27 = vsel %vm1453_vm7, %v1651_v35, 0.0 }
0x16fb   :  { %1654 = vadd.xlane.f32.xlu1 %v1653_v27 }
0x16fd   :  { %v1673_v44 = vpop.permute.xlu0 %1672 }
0x16fe   :  { %v1675_v32 = vsel %vm1453_vm7, %v1673_v44, 0.0 }
0x16ff   :  { %1676 = vadd.xlane.f32.xlu1 %v1675_v32 }
0x1701   :  { %v1440_v26 = vpop.permute.xlu0 %1439 }
0x1705   :  { %v1448_v45 = vpop.permute.xlu0 %1447 }
0x1706   :  { %v1454_v46 = vsel %vm1453_vm7, %v1440_v26, %v1448_v45 }
0x1707   :  { %v1457_v12 = vsel %vm1456_vm13, %v1454_v46, 0.0 }
0x1708   :  { %1459 = vst [vmem:[%s2689_s7] sm:$0xff] %v1457_v12 }
0x1709   :  { %v1450_v52 = vpop.permute.xlu0 %1449 }
0x1710   :  { %1441 = vrot.lane.b32.xlu1 %v2585_v4, %s2215_s10  ;;  %s2655_s10 = scalar_select %p1685_p7, 1.0, 0.0 }
0x1712   :  { %s1692_s26 = sadd.f32 %s2655_s10, %s2657_s24 }
0x1714   :  { %v1697_v60 = vstv %s1692_s26 }
0x1788   :  { %v1655_v31 = vpop.xlane.xlu1 %1654 }
0x1789   :  { %v1656_v47 = vrot.slane %v1655_v31, 4 }
0x178b   :  { %v1657_v49 = vadd.f32 %v1656_v47, %v1655_v31 }
0x178c   :  { %v1677_v50 = vpop.xlane.xlu1 %1676 }
0x178d   :  { %v1658_v51 = vrot.slane %v1657_v49, 2  ;;  %v1678_v57 = vrot.slane %v1677_v50, 4 }
0x178f   :  { %v1659_v48 = vadd.f32 %v1658_v51, %v1657_v49  ;;  %v1679_v56 = vadd.f32 %v1678_v57, %v1677_v50 }
0x1790   :  { %v1442_v53 = vpop.permute.xlu1 %1441 }
0x1791   :  { %v1455_v54 = vsel %vm1453_vm7, %v1442_v53, %v1450_v52  ;;  %v1660_v55 = vrot.slane %v1659_v48, 1  ;;  %v1680_v61 = vrot.slane %v1679_v56, 2 }
0x1792   :  { %v1458_v11 = vsel %vm1456_vm13, %v1455_v54, 0.0 }
0x1793   :  { %1460 = vst [vmem:[%s2689_s7 + $0x8] sm:$0xff] %v1458_v11  ;;  %v1661_v4 = vadd.f32 %v1660_v55, %v1659_v48  ;;  %v1681_v41 = vadd.f32 %v1680_v61, %v1679_v56  ;;  %s1553_s7 = sadd.f32 %s2592_s29, %s2568_s25 }
0x1795   :  { %2039 = vpush %v1661_v4  ;;  %v1682_v62 = vrot.slane %v1681_v41, 1  ;;  %s1573_s27 = ssub.f32 %s1553_s7, %s2594_s30 }
0x1797   :  { %v1683_v7 = vadd.f32 %v1682_v62, %v1681_v41  ;;  %s1574_s6 = smul.f32 %s1573_s27, %s2657_s24 }
0x17c6   :  { %s2040_s28 = spop %2039 }
0x17c7   :  { %v1663_v59 = vstv %s2040_s28 }
0x17c8   :  { %2178 = vlog2.f32 %v1663_v59 }
0x17c9   :  { %2180 = vrcp.f32 %v1693_v58 }
0x17ca   :  { %2182 = vrcp.f32 %v1697_v60 }
0x17d2   :  { %v2179_v3 = vpop.eup %2178 }
0x17d3   :  { %v1665_v29 = vmul.f32 0.6931472, %v2179_v3  ;;  %v2181_v6 = vpop.eup %2180 }
0x17d4   :  { %v2183_v8 = vpop.eup %2182 }
0x17d5   :  { %2041 = vpush %v1665_v29 }
0x17d6   :  { %2043 = vpush %v1683_v7 }
0x17d7   :  { %2045 = vpush %v2181_v6 }
0x17d8   :  { %2047 = vpush %v2183_v8 }
0x1806   :  { %s2042_s9 = spop %2041 }
0x1807   :  { %s1667_s1 = sadd.f32 %s2042_s9, %s2621_s18  ;;  %s2044_s11 = spop %2043 }
0x1808   :  { %s2046_s13 = spop %2045 }
0x1809   :  { %s1687_s12 = ssub.f32 %s1667_s1, %s2044_s11  ;;  %s2048_s14 = spop %2047 }
0x180a   :  { %s1696_s16 = smul.f32 %s2046_s13, %s2626_s20 }
0x180b   :  { %s1688_s0 = smul.f32 %s1687_s12, %s2655_s10 }
0x180d   :  { %s1691_s15 = sadd.f32 %s1688_s0, %s1574_s6 }
0x180f   :  { %s1700_s17 = smul.f32 %s2048_s14, %s1691_s15 }
0x1811   :  { %s1701_s19 = sadd.f32 %s1700_s17, %s1696_s16 }
0x1813   :  { %s1702_s5 = smul.f32 0.5, %s1701_s19 }
0x1815   :  { %1704 = sst [smem:[#allocation5]] %s1702_s5 }
0x1816   :  { %2205 = shalt.err (!%p2202_p11)
}
0x1817   :  { %s2226_s22 = smov [#allocation5]  }
0x1818   :  { %1714 = dma.smem_to_hbm %s2226_s22, 16, %s2690_s8, [#allocation3]  }
0x1819   :  { %2208 = dma.done.wait [#allocation3], 16  }
0x181a   :  { %2209 = vsyncadd [#allocation3], 4294967280 }
0x181b   :  { %1720 = sfence }
0x181c   :  { %1721 = vsyncpa [#allocation3], 1 }
0x181d   :  { %1722 = vsyncpa [#allocation4], 1 }

</bundles_post_ra>
